<compile_context>
chip_gen: v5e
topology: v5e:2x2
jax: 0.10.0
libtpu: 0.0.40
codegen_flags: <defaults>
</compile_context>

<pallas_src>
import functools
import math

import jax
import jax.numpy as jnp
from jax.experimental import pallas as pl
from jax.experimental.pallas import tpu as pltpu

_LANE = 128
_SUBLANE = 8
_VMEM_LIMIT = 64 * 1024 * 1024   # raise the scoped-VMEM ceiling (default 16/32 MiB)


def _round_up(x, m):
    return (x + m - 1) // m * m


def _pad2(a, rows, cols):
    pr, pc = rows - a.shape[0], cols - a.shape[1]
    if pr == 0 and pc == 0:
        return a
    return jnp.pad(a, ((0, pr), (0, pc)))


# ----------------------------------------------------------------------------
# QLoRALinear
#   pre-pass:  mid = x @ A            (rank padded to 128 lanes, f32 accum)
#   main:      o   = x @ W + bias + mid @ B_scaled
# ----------------------------------------------------------------------------
def _xa_kernel(x_ref, a_ref, mid_ref, acc_ref):
    kk = pl.program_id(1)

    @pl.when(kk == 0)
    def _():
        acc_ref[...] = jnp.zeros_like(acc_ref)

    acc_ref[...] += jnp.dot(x_ref[...], a_ref[...],
                            preferred_element_type=jnp.float32)

    @pl.when(kk == pl.num_programs(1) - 1)
    def _():
        mid_ref[...] = acc_ref[...].astype(mid_ref.dtype)


def _qlora_linear_kernel(x_ref, w_ref, mid_ref, bsc_ref, bias_ref, o_ref,
                         acc_ref):
    kk = pl.program_id(2)

    @pl.when(kk == 0)
    def _():
        # Fold the bias into the accumulator init (saves a finalize VPU add).
        acc_ref[...] = jnp.broadcast_to(bias_ref[...], acc_ref.shape)

    acc_ref[...] += jnp.dot(x_ref[...], w_ref[...],
                            preferred_element_type=jnp.float32)

    @pl.when(kk == pl.num_programs(2) - 1)
    def _():
        lora = jnp.dot(mid_ref[...], bsc_ref[...],
                       preferred_element_type=jnp.float32)
        o_ref[...] = (acc_ref[...] + lora).astype(o_ref.dtype)


def prepare_linear(w_t, bias, lora_a, lora_b, scaling, *, tile_n=512, tile_k=512):
    """One-time (init-time) prep of the frozen / LoRA weights for qlora_linear.

    w_t: (K, N) base weight (already transposed from PyTorch's (out, in)).
    bias: (N,)   lora_a: (K, r)   lora_b: (r, N).
    Pads to tile/lane multiples, folds `scaling` into lora_B, casts MXU
    operands to bf16 (accumulation stays f32 in-kernel).
    """
    k, n = w_t.shape
    r = lora_a.shape[1]
    tile_n = min(tile_n, _round_up(n, _LANE))
    tile_k = min(tile_k, _round_up(k, _LANE))
    n_p = _round_up(n, tile_n)
    k_p = _round_up(k, tile_k)
    r_p = _round_up(r, _LANE)          # rank padded to a full lane group
    return dict(
        w=_pad2(w_t, k_p, n_p).astype(jnp.bfloat16),
        a=_pad2(lora_a, k_p, r_p).astype(jnp.bfloat16),
        b_scaled=_pad2(lora_b * scaling, r_p, n_p).astype(jnp.bfloat16),
        bias=_pad2(bias.reshape(1, n).astype(jnp.float32), 1, n_p),
        k=k, n=n, k_p=k_p, n_p=n_p, r_p=r_p, tile_n=tile_n, tile_k=tile_k,
    )


def qlora_linear(x, prep, *, tile_m=128):
    """x: (M, K) activations; prep: output of prepare_linear."""
    m, k = x.shape
    assert k == prep["k"], (k, prep["k"])
    n, k_p, n_p, r_p = prep["n"], prep["k_p"], prep["n_p"], prep["r_p"]
    tile_n, tile_k = prep["tile_n"], prep["tile_k"]
    out_dtype = x.dtype

    tile_m = min(tile_m, _round_up(m, _SUBLANE))
    m_p = _round_up(m, tile_m)
    x_p = _pad2(x, m_p, k_p).astype(jnp.bfloat16)

    grid_m = m_p // tile_m
    grid_k = k_p // tile_k

    # Pre-pass: mid = x @ A, computed once per M tile (not once per N tile).
    mid = pl.pallas_call(
        _xa_kernel,
        out_shape=jax.ShapeDtypeStruct((m_p, r_p), jnp.bfloat16),
        grid_spec=pltpu.PrefetchScalarGridSpec(
            num_scalar_prefetch=0,
            grid=(grid_m, grid_k),
            in_specs=[
                pl.BlockSpec((tile_m, tile_k), lambda i, kk: (i, kk)),
                pl.BlockSpec((tile_k, r_p), lambda i, kk: (kk, 0)),
            ],
            out_specs=pl.BlockSpec((tile_m, r_p), lambda i, kk: (i, 0)),
            scratch_shapes=[pltpu.VMEM((tile_m, r_p), jnp.float32)],
        ),
        compiler_params=pltpu.CompilerParams(
            dimension_semantics=("parallel", "arbitrary"),
            vmem_limit_bytes=_VMEM_LIMIT),
    )(x_p, prep["a"])

    # Main: o = x @ W + bias + mid @ B_scaled   (M/N/K tiled, K last).
    out = pl.pallas_call(
        _qlora_linear_kernel,
        out_shape=jax.ShapeDtypeStruct((m_p, n_p), out_dtype),
        grid_spec=pltpu.PrefetchScalarGridSpec(
            num_scalar_prefetch=0,
            grid=(grid_m, n_p // tile_n, grid_k),
            in_specs=[
                pl.BlockSpec((tile_m, tile_k), lambda i, j, kk: (i, kk)),
                pl.BlockSpec((tile_k, tile_n), lambda i, j, kk: (kk, j)),
                pl.BlockSpec((tile_m, r_p), lambda i, j, kk: (i, 0)),
                pl.BlockSpec((r_p, tile_n), lambda i, j, kk: (0, j)),
                pl.BlockSpec((1, tile_n), lambda i, j, kk: (0, j)),
            ],
            out_specs=pl.BlockSpec((tile_m, tile_n), lambda i, j, kk: (i, j)),
            scratch_shapes=[pltpu.VMEM((tile_m, tile_n), jnp.float32)],
        ),
        compiler_params=pltpu.CompilerParams(
            dimension_semantics=("parallel", "parallel", "arbitrary"),
            vmem_limit_bytes=_VMEM_LIMIT),
    )(x_p, prep["w"], mid, prep["b_scaled"], prep["bias"])
    return out[:m, :n]


# ----------------------------------------------------------------------------
# QLoRAEmbedding:  o = E[ids] + (A[ids] @ B_scaled)
# Token ids scalar-prefetched to SMEM; rows of a lane-aligned [E | A_pad] HBM
# table are DMA-gathered into a 2-slot VMEM buffer (double-buffered across
# grid steps), then the rank-r LoRA matmul runs on the gathered A rows.
# ----------------------------------------------------------------------------
def _qlora_embed_kernel(ids_ref, tab_hbm, bsc_ref, o_ref, buf, sems, *,
                        tile_m, d_p):
    i = pl.program_id(0)
    n = pl.num_programs(0)

    def issue(tile_idx, slot):
        base = tile_idx * tile_m

        @pl.loop(0, tile_m)
        def _(t):
            row = ids_ref[base + t]
            pltpu.make_async_copy(tab_hbm.at[row], buf.at[slot, t],
                                  sems.at[slot, t]).start()

    # Prologue: gather rows for tile 0.
    @pl.when(i == 0)
    def _():
        issue(0, 0)

    # Prefetch tile i+1's rows before consuming tile i (hide gather latency).
    @pl.when(i + 1 < n)
    def _():
        issue(i + 1, (i + 1) % 2)

    slot = i % 2
    base = i * tile_m

    @pl.loop(0, tile_m)
    def _(t):
        row = ids_ref[base + t]   # rebuild the exact descriptor that was issued
        pltpu.make_async_copy(tab_hbm.at[row], buf.at[slot, t],
                              sems.at[slot, t]).wait()

    rows = buf[slot]                                # (tile_m, d_p + r_p) f32
    base_rows = rows[:, :d_p]                       # (tile_m, d_p)
    a_rows = rows[:, d_p:].astype(jnp.bfloat16)     # (tile_m, r_p)
    lora = jnp.dot(a_rows, bsc_ref[...], preferred_element_type=jnp.float32)
    o_ref[...] = (base_rows + lora).astype(o_ref.dtype)


def prepare_embedding(emb_w, lora_a, lora_b, scaling):
    """One-time prep: lane-aligned [E | A_pad] table + scaled/padded lora_B."""
    v, d = emb_w.shape
    r = lora_a.shape[1]
    d_p = _round_up(d, _LANE)
    r_p = _round_up(r, _LANE)
    tab = jnp.concatenate(
        [_pad2(emb_w, v, d_p), _pad2(lora_a.astype(emb_w.dtype), v, r_p)],
        axis=1)                                                  # (V, d_p+r_p)
    bsc = _pad2(lora_b * scaling, r_p, d_p).astype(jnp.bfloat16)
    return dict(tab=tab, b_scaled=bsc, d=d, d_p=d_p, r_p=r_p)


def qlora_embedding(tokens, prep, *, tile_m=128):
    """tokens: (B, S) int32; prep: output of prepare_embedding."""
    b, s = tokens.shape
    d, d_p, r_p = prep["d"], prep["d_p"], prep["r_p"]
    tab, bsc = prep["tab"], prep["b_scaled"]

    flat = tokens.reshape(-1).astype(jnp.int32)
    m = flat.shape[0]
    tile_m = min(tile_m, _round_up(m, _SUBLANE))
    m_p = _round_up(m, tile_m)
    if m_p != m:
        flat = jnp.pad(flat, (0, m_p - m))

    kernel = functools.partial(_qlora_embed_kernel, tile_m=tile_m, d_p=d_p)
    out = pl.pallas_call(
        kernel,
        out_shape=jax.ShapeDtypeStruct((m_p, d_p), tab.dtype),
        grid_spec=pltpu.PrefetchScalarGridSpec(
            num_scalar_prefetch=1,
            grid=(m_p // tile_m,),
            in_specs=[
                pl.BlockSpec(memory_space=pl.ANY),                 # [E|A] HBM
                pl.BlockSpec((r_p, d_p), lambda i, ids: (0, 0)),   # B*scaling
            ],
            out_specs=pl.BlockSpec((tile_m, d_p), lambda i, ids: (i, 0)),
            scratch_shapes=[
                pltpu.VMEM((2, tile_m, d_p + r_p), tab.dtype),     # 2-slot buf
                pltpu.SemaphoreType.DMA((2, tile_m)),
            ],
        ),
        compiler_params=pltpu.CompilerParams(
            dimension_semantics=("arbitrary",),   # sequential: cross-step DB
            vmem_limit_bytes=_VMEM_LIMIT),
    )(flat, tab, bsc)
    return out[:m, :d].reshape(b, s, d)


# ----------------------------------------------------------------------------
# Synthetic QLoRA-adapted model:  Embedding -> Linear(D->H) -> Linear(H->D)
# ----------------------------------------------------------------------------
def prepare_qlora_params(params, scaling):
    """Hoist all frozen-weight prep (concat / pad / scale fold / bf16 cast)
    out of the per-call forward path — done once at init time."""
    return dict(
        emb=prepare_embedding(params["emb_w"], params["emb_A"],
                              params["emb_B"], scaling),
        lin1=prepare_linear(params["w1_t"], params["b1"],
                            params["A1"], params["B1"], scaling),
        lin2=prepare_linear(params["w2_t"], params["b2"],
                            params["A2"], params["B2"], scaling),
    )


def qlora_model_forward(tokens, prepared):
    b, s = tokens.shape
    h = qlora_embedding(tokens, prepared["emb"])      # (B, S, D)  f32
    x = h.reshape(b * s, h.shape[-1])
    x = qlora_linear(x, prepared["lin1"])             # (M, H)
    x = qlora_linear(x, prepared["lin2"])             # (M, D)
    return x.reshape(b, s, -1)


def _reference_forward(tokens, params, *, scaling):
    """Pure-JAX f32 reference matching the PyTorch module semantics."""
    base = jnp.take(params["emb_w"], tokens, axis=0)
    lora = jnp.take(params["emb_A"], tokens, axis=0) @ params["emb_B"]
    h = base + lora * scaling
    h = (h @ params["w1_t"] + params["b1"]
         + (h @ params["A1"] @ params["B1"]) * scaling)
    h = (h @ params["w2_t"] + params["b2"]
         + (h @ params["A2"] @ params["B2"]) * scaling)
    return h


if __name__ == "__main__":
    # Config matching QLoRABaseLayer defaults.
    RANK, LORA_ALPHA = 8, 8
    SCALING = LORA_ALPHA / math.sqrt(RANK)   # use_rslora=True

    # Small but lane-dense feature dims; S chosen so the embedding gather and
    # the linear M axis span 2 tiles (exercises the double-buffered paths).
    VOCAB, D, H = 256, 128, 256
    B, S = 2, 128

    key = jax.random.PRNGKey(0)
    ks = jax.random.split(key, 12)

    # Note: the module inits lora_B to zeros; we use small non-zero values so
    # the LoRA branch is numerically exercised.
    params = {
        "emb_w": jax.random.normal(ks[0], (VOCAB, D), jnp.float32),
        "emb_A": jax.random.uniform(ks[1], (VOCAB, RANK), jnp.float32, -0.5, 0.5),
        "emb_B": jax.random.uniform(ks[2], (RANK, D), jnp.float32, -0.05, 0.05),
        # PyTorch Linear weight is (out, in); stored pre-transposed (in, out).
        "w1_t": jax.random.uniform(ks[3], (D, H), jnp.float32, -0.2, 0.2),
        "b1": jax.random.uniform(ks[4], (H,), jnp.float32, -0.1, 0.1),
        "A1": jax.random.uniform(ks[5], (D, RANK), jnp.float32, -0.5, 0.5),
        "B1": jax.random.uniform(ks[6], (RANK, H), jnp.float32, -0.05, 0.05),
        "w2_t": jax.random.uniform(ks[7], (H, D), jnp.float32, -0.2, 0.2),
        "b2": jax.random.uniform(ks[8], (D,), jnp.float32, -0.1, 0.1),
        "A2": jax.random.uniform(ks[9], (H, RANK), jnp.float32, -0.5, 0.5),
        "B2": jax.random.uniform(ks[10], (RANK, D), jnp.float32, -0.05, 0.05),
    }

    tokens = jax.random.randint(ks[11], (B, S), 0, VOCAB, dtype=jnp.int32)

    prepared = prepare_qlora_params(params, SCALING)     # init-time weight prep
    out = qlora_model_forward(tokens, prepared)
    out = jax.block_until_ready(out)

    ref = _reference_forward(tokens, params, scaling=SCALING)
    assert out.shape == (B, S, D)
    err = float(jnp.max(jnp.abs(out - ref)))
    # Tolerance loosened vs the f32 reference: MXU operands are bf16 (f32
    # accumulation), so per-element error is ~0.2-0.4% of operand magnitude.
    assert jnp.allclose(out, ref, atol=2.5e-1, rtol=5e-2), f"max abs err {err}"

    print("KERNEL_OK")
</pallas_src>

<mosaic_0001>
module attributes {stable_mosaic.version = 11 : i64} {
  func.func @_qlora_embed_kernel(%arg0: i32, %arg1: memref<256xi32, #tpu.memory_space<smem>>, %arg2: memref<256x256xf32, #tpu.memory_space<any>>, %arg3: memref<128x128xbf16, #tpu.memory_space<vmem>>, %arg4: memref<128x128xf32, #tpu.memory_space<vmem>>, %arg5: memref<2x128x256xf32, #tpu.memory_space<vmem>>, %arg6: memref<2x128x!tpu.dma_semaphore, #tpu.memory_space<semaphore_mem>>) attributes {dimension_semantics = [#tpu.dimension_semantics<arbitrary>], iteration_bounds = array<i64: 2>, scalar_prefetch = 1 : i64, scratch_operands = 2 : i64, tpu.core_type = #tpu.core_type<tc>, window_params = [{}, {pipeline_mode = #tpu.pipeline_mode<synchronous>, transform_indices = @transform_1, window_bounds = array<i64: 128, 128>}, {transform_indices = @transform_2, window_bounds = array<i64: 128, 128>}]} {
    %c0_i32 = arith.constant 0 : i32
    %0 = arith.cmpi eq, %arg0, %c0_i32 : i32
    %1 = arith.extui %0 : i1 to i32
    %c0_i32_0 = arith.constant 0 : i32
    %2 = arith.cmpi ne, %1, %c0_i32_0 : i32
    scf.if %2 {
      %c0_i32_17 = arith.constant 0 : i32
      %c128_i32_18 = arith.constant 128 : i32
      %29 = arith.addi %c0_i32_17, %c128_i32_18 : i32
      %c1_i32_19 = arith.constant 1 : i32
      scf.for %arg7 = %c0_i32_17 to %29 step %c1_i32_19  : i32 {
        %c1_i32_21 = arith.constant 1 : i32
        %30 = arith.muli %arg7, %c1_i32_21 : i32
        %c0_i32_22 = arith.constant 0 : i32
        %31 = arith.addi %c0_i32_22, %30 : i32
        %c0_i32_23 = arith.constant 0 : i32
        %32 = arith.addi %c0_i32_23, %31 : i32
        %33 = arith.index_cast %32 : i32 to index
        %34 = memref.load %arg1[%33] : memref<256xi32, #tpu.memory_space<smem>>
        %c0_i32_24 = arith.constant 0 : i32
        %c0_i32_25 = arith.constant 0 : i32
        %c0_i32_26 = arith.constant 0 : i32
        %35 = tpu.memref_slice %arg2[%34, %c0_i32_26] : memref<256x256xf32, #tpu.memory_space<any>> -> memref<1x256xf32, #tpu.memory_space<any>>
        %36 = tpu.memref_squeeze %35 : memref<1x256xf32, #tpu.memory_space<any>> -> memref<256xf32, #tpu.memory_space<any>>
        %c0_i32_27 = arith.constant 0 : i32
        %37 = tpu.memref_slice %arg5[%c0_i32_24, %31, %c0_i32_27] : memref<2x128x256xf32, #tpu.memory_space<vmem>> -> memref<1x1x256xf32, #tpu.memory_space<vmem>>
        %38 = tpu.memref_squeeze %37 : memref<1x1x256xf32, #tpu.memory_space<vmem>> -> memref<256xf32, #tpu.memory_space<vmem>>
        %39 = tpu.memref_slice %arg6[%c0_i32_25, %31] : memref<2x128x!tpu.dma_semaphore, #tpu.memory_space<semaphore_mem>> -> memref<1x1x!tpu.dma_semaphore, #tpu.memory_space<semaphore_mem>>
        %40 = tpu.memref_squeeze %39 : memref<1x1x!tpu.dma_semaphore, #tpu.memory_space<semaphore_mem>> -> memref<!tpu.dma_semaphore, #tpu.memory_space<semaphore_mem>>
        tpu.enqueue_dma source(%36 : memref<256xf32, #tpu.memory_space<any>>) target(%38 : memref<256xf32, #tpu.memory_space<vmem>>) target_semaphore(%40 : memref<!tpu.dma_semaphore, #tpu.memory_space<semaphore_mem>>)
      }
      %c128_i32_20 = arith.constant 128 : i32
    } else {
    }
    %c1_i32 = arith.constant 1 : i32
    %3 = arith.addi %arg0, %c1_i32 : i32
    %c2_i32 = arith.constant 2 : i32
    %4 = arith.cmpi slt, %3, %c2_i32 : i32
    %5 = arith.extui %4 : i1 to i32
    %c0_i32_1 = arith.constant 0 : i32
    %6 = arith.cmpi ne, %5, %c0_i32_1 : i32
    scf.if %6 {
      %c1_i32_17 = arith.constant 1 : i32
      %29 = arith.addi %arg0, %c1_i32_17 : i32
      %c1_i32_18 = arith.constant 1 : i32
      %30 = arith.addi %arg0, %c1_i32_18 : i32
      %c2_i32_19 = arith.constant 2 : i32
      %c0_i32_20 = arith.constant 0 : i32
      %31 = arith.cmpi eq, %c2_i32_19, %c0_i32_20 : i32
      %c1_i32_21 = arith.constant 1 : i32
      %32 = arith.select %31, %c1_i32_21, %c2_i32_19 : i32
      %33 = arith.remsi %30, %32 : i32
      %c0_i32_22 = arith.constant 0 : i32
      %34 = arith.cmpi ne, %33, %c0_i32_22 : i32
      %c0_i32_23 = arith.constant 0 : i32
      %35 = arith.cmpi slt, %33, %c0_i32_23 : i32
      %c0_i32_24 = arith.constant 0 : i32
      %36 = arith.cmpi slt, %32, %c0_i32_24 : i32
      %37 = arith.xori %35, %36 : i1
      %38 = arith.andi %37, %34 : i1
      %39 = arith.addi %33, %32 : i32
      %40 = arith.select %38, %39, %33 : i32
      %c128_i32_25 = arith.constant 128 : i32
      %41 = arith.muli %29, %c128_i32_25 : i32
      %c0_i32_26 = arith.constant 0 : i32
      %c128_i32_27 = arith.constant 128 : i32
      %42 = arith.addi %c0_i32_26, %c128_i32_27 : i32
      %c1_i32_28 = arith.constant 1 : i32
      scf.for %arg7 = %c0_i32_26 to %42 step %c1_i32_28  : i32 {
        %c1_i32_30 = arith.constant 1 : i32
        %43 = arith.muli %arg7, %c1_i32_30 : i32
        %c0_i32_31 = arith.constant 0 : i32
        %44 = arith.addi %c0_i32_31, %43 : i32
        %45 = arith.addi %41, %44 : i32
        %46 = arith.index_cast %45 : i32 to index
        %47 = memref.load %arg1[%46] : memref<256xi32, #tpu.memory_space<smem>>
        %c0_i32_32 = arith.constant 0 : i32
        %48 = tpu.memref_slice %arg2[%47, %c0_i32_32] : memref<256x256xf32, #tpu.memory_space<any>> -> memref<1x256xf32, #tpu.memory_space<any>>
        %49 = tpu.memref_squeeze %48 : memref<1x256xf32, #tpu.memory_space<any>> -> memref<256xf32, #tpu.memory_space<any>>
        %c0_i32_33 = arith.constant 0 : i32
        %50 = tpu.memref_slice %arg5[%40, %44, %c0_i32_33] : memref<2x128x256xf32, #tpu.memory_space<vmem>> -> memref<1x1x256xf32, #tpu.memory_space<vmem>>
        %51 = tpu.memref_squeeze %50 : memref<1x1x256xf32, #tpu.memory_space<vmem>> -> memref<256xf32, #tpu.memory_space<vmem>>
        %52 = tpu.memref_slice %arg6[%40, %44] : memref<2x128x!tpu.dma_semaphore, #tpu.memory_space<semaphore_mem>> -> memref<1x1x!tpu.dma_semaphore, #tpu.memory_space<semaphore_mem>>
        %53 = tpu.memref_squeeze %52 : memref<1x1x!tpu.dma_semaphore, #tpu.memory_space<semaphore_mem>> -> memref<!tpu.dma_semaphore, #tpu.memory_space<semaphore_mem>>
        tpu.enqueue_dma source(%49 : memref<256xf32, #tpu.memory_space<any>>) target(%51 : memref<256xf32, #tpu.memory_space<vmem>>) target_semaphore(%53 : memref<!tpu.dma_semaphore, #tpu.memory_space<semaphore_mem>>)
      }
      %c128_i32_29 = arith.constant 128 : i32
    } else {
    }
    %c2_i32_2 = arith.constant 2 : i32
    %c0_i32_3 = arith.constant 0 : i32
    %7 = arith.cmpi eq, %c2_i32_2, %c0_i32_3 : i32
    %c1_i32_4 = arith.constant 1 : i32
    %8 = arith.select %7, %c1_i32_4, %c2_i32_2 : i32
    %9 = arith.remsi %arg0, %8 : i32
    %c0_i32_5 = arith.constant 0 : i32
    %10 = arith.cmpi ne, %9, %c0_i32_5 : i32
    %c0_i32_6 = arith.constant 0 : i32
    %11 = arith.cmpi slt, %9, %c0_i32_6 : i32
    %c0_i32_7 = arith.constant 0 : i32
    %12 = arith.cmpi slt, %8, %c0_i32_7 : i32
    %13 = arith.xori %11, %12 : i1
    %14 = arith.andi %13, %10 : i1
    %15 = arith.addi %9, %8 : i32
    %16 = arith.select %14, %15, %9 : i32
    %c128_i32 = arith.constant 128 : i32
    %17 = arith.muli %arg0, %c128_i32 : i32
    %c0_i32_8 = arith.constant 0 : i32
    %c128_i32_9 = arith.constant 128 : i32
    %18 = arith.addi %c0_i32_8, %c128_i32_9 : i32
    %c1_i32_10 = arith.constant 1 : i32
    scf.for %arg7 = %c0_i32_8 to %18 step %c1_i32_10  : i32 {
      %c1_i32_17 = arith.constant 1 : i32
      %29 = arith.muli %arg7, %c1_i32_17 : i32
      %c0_i32_18 = arith.constant 0 : i32
      %30 = arith.addi %c0_i32_18, %29 : i32
      %31 = arith.addi %17, %30 : i32
      %32 = arith.index_cast %31 : i32 to index
      %33 = memref.load %arg1[%32] : memref<256xi32, #tpu.memory_space<smem>>
      %c0_i32_19 = arith.constant 0 : i32
      %34 = tpu.memref_slice %arg2[%33, %c0_i32_19] : memref<256x256xf32, #tpu.memory_space<any>> -> memref<1x256xf32, #tpu.memory_space<any>>
      %35 = tpu.memref_squeeze %34 : memref<1x256xf32, #tpu.memory_space<any>> -> memref<256xf32, #tpu.memory_space<any>>
      %c0_i32_20 = arith.constant 0 : i32
      %36 = tpu.memref_slice %arg5[%16, %30, %c0_i32_20] : memref<2x128x256xf32, #tpu.memory_space<vmem>> -> memref<1x1x256xf32, #tpu.memory_space<vmem>>
      %37 = tpu.memref_squeeze %36 : memref<1x1x256xf32, #tpu.memory_space<vmem>> -> memref<256xf32, #tpu.memory_space<vmem>>
      %38 = tpu.memref_slice %arg6[%16, %30] : memref<2x128x!tpu.dma_semaphore, #tpu.memory_space<semaphore_mem>> -> memref<1x1x!tpu.dma_semaphore, #tpu.memory_space<semaphore_mem>>
      %39 = tpu.memref_squeeze %38 : memref<1x1x!tpu.dma_semaphore, #tpu.memory_space<semaphore_mem>> -> memref<!tpu.dma_semaphore, #tpu.memory_space<semaphore_mem>>
      tpu.wait_dma2 semaphore(%39 : memref<!tpu.dma_semaphore, #tpu.memory_space<semaphore_mem>>) src(%35 : memref<256xf32, #tpu.memory_space<any>>) dst(%37 : memref<256xf32, #tpu.memory_space<vmem>>)
    }
    %c128_i32_11 = arith.constant 128 : i32
    %19 = arith.index_cast %16 : i32 to index
    %c0 = arith.constant 0 : index
    %c0_12 = arith.constant 0 : index
    %20 = vector.load %arg5[%19, %c0, %c0_12] : memref<2x128x256xf32, #tpu.memory_space<vmem>>, vector<1x128x256xf32>
    %21 = vector.shape_cast %20 : vector<1x128x256xf32> to vector<128x256xf32>
    %22 = vector.extract_strided_slice %21 {offsets = [0, 0], sizes = [128, 128], strides = [1, 1]} : vector<128x256xf32> to vector<128x128xf32>
    %23 = vector.extract_strided_slice %21 {offsets = [0, 128], sizes = [128, 128], strides = [1, 1]} : vector<128x256xf32> to vector<128x128xf32>
    %24 = arith.truncf %23 : vector<128x128xf32> to vector<128x128xbf16>
    %c0_13 = arith.constant 0 : index
    %c0_14 = arith.constant 0 : index
    %25 = vector.load %arg3[%c0_13, %c0_14] : memref<128x128xbf16, #tpu.memory_space<vmem>>, vector<128x128xbf16>
    %cst = arith.constant dense<0.000000e+00> : vector<128x128xf32>
    %26 = tpu.matmul %24, %25, %cst {dimension_numbers = #tpu.dot_dimension_numbers<[1], [0], [0], [1], [0, 0, 1, 1], [], []>} : vector<128x128xbf16>, vector<128x128xbf16>, vector<128x128xf32> -> vector<128x128xf32>
    %27 = arith.addf %22, %26 : vector<128x128xf32>
    %c0_15 = arith.constant 0 : index
    %c0_16 = arith.constant 0 : index
    %28 = vector.load %arg4[%c0_15, %c0_16] : memref<128x128xf32, #tpu.memory_space<vmem>>, vector<128x128xf32>
    tpu.vector_store %arg4[%c0_15, %c0_16], %27 {strides = array<i32>} : memref<128x128xf32, #tpu.memory_space<vmem>>, vector<128x128xf32>,
    return
  }
  func.func @transform_1(%arg0: i32, %arg1: memref<256xi32, #tpu.memory_space<smem>>) -> (i32, i32) {
    %c0_i32 = arith.constant 0 : i32
    %c0_i32_0 = arith.constant 0 : i32
    %c0_i32_1 = arith.constant 0 : i32
    return %c0_i32, %c0_i32_0 : i32, i32
  }
  func.func @transform_2(%arg0: i32, %arg1: memref<256xi32, #tpu.memory_space<smem>>) -> (i32, i32) {
    %c0_i32 = arith.constant 0 : i32
    %c0_i32_0 = arith.constant 0 : i32
    return %arg0, %c0_i32 : i32, i32
  }
}

</mosaic_0001>

<bundles_post_ra>
// kernel: tpu_custom_call.1
= control target key start
LH: loop header
LB: loop body
LE: loop exit
PB: predicated region body
PF: predicated region fallthrough
CT: control target
= control target key end

     0   :  { %s2945_s15 = smov [#allocation5]   ;;  %s3219_s0 = inlined_call_operand.hbm [shape: s32[256], index: 0, kind: input, shape index: {}]   ;;  %s3220_s1 = inlined_call_operand.hbm [shape: f32[256,256], index: 1, kind: input, shape index: {}]   ;;  %s3221_s2 = inlined_call_operand.hbm [shape: bf16[128,128], index: 2, kind: input, shape index: {}]   ;;  %s3222_s3 = inlined_call_operand.hbm [shape: f32[256,128], index: 3, kind: output, shape index: {}]  }
   0x1   :  { %3225 = sst [smem:[#allocation19_spill]] %s3221_s2  ;;  %s9_s14 = sshll.u32 %s3219_s0, 4  ;;  %s10_s14 = int_to_ptr.hbm [resolvable:$true] %s9_s14 }
   0x2   :  { %12 = dma.hbm_to_smem %s10_s14, 32, %s2945_s15, [#allocation4] }
   0x3   :  { %2905 = dma.done.wait [#allocation4], 32 }
   0x4   :  { %2906 = vsyncadd [#allocation4], 4294967264 }
   0x5   :  { %15 = sfence }
   0x6   :  { %16 = vsyncpa [#allocation7], 0 }
   0x7   :  { %17 = vsyncpa [#allocation8], 0 }
   0x8   :  { %19 = vsyncpa [#allocation8 + $0x1], 0  ;;  %s2980_s16 = smov 0   ;;  %s2982_s17 = smov 0  }
   0x9   :  { %s2984_s18 = smov 0   ;;  %s2986_s19 = smov 0  }
   0xa LB: > { %s3001_s0 = sadd.s32 4294967295, %s2931_s19   ;;  %s2323_s20 = sadd.s32 4294967294, %s2931_s19   ;;  %s2931_s19 = sphi %s2986_s19, %s3239_s19   ;;  %s2927_s18 = sphi %s2984_s18, %s3238_s18   ;;  %s2923_s17 = sphi %s2982_s17, %s3237_s17   ;;  %s2919_s16 = sphi %s2980_s16, %s3236_s16  }
   0xb   : > { %s3005_s21 = sadd.s32 1, %s2931_s19   ;;  %s53_s22 = sadd.s32 1, %s2927_s18 }
   0xc   : > { %s50_s23 = ssub.s32 %s2931_s19, %s3005_s21  ;;  %p63_p0 = scmp.ne.s32.totalorder %s2927_s18, %s2923_s17 }
   0xd   : > { %p51_p1 = scmp.eq.s32.totalorder %s50_s23, 0  ;;  %p64_p2 = scmp.eq.s32.totalorder %s3001_s0, 1 }
   0xe   : > { %p69_p3 = scmp.ne.s32.totalorder %s2923_s17, %s2919_s16  ;;  %p70_p4 = scmp.eq.s32.totalorder %s2323_s20, 1 }
   0xf   : > { %s3016_s24 = scalar_select %p51_p1, %s2927_s18, %s53_s22  }
  0x10   : > { %p3018_p5 = por %p64_p2, %p63_p0  ;;  %p3022_p6 = por %p70_p4, %p69_p3 }
  0x11   : > { %3226 = sst [smem:[#allocation16_spill]] %s3016_s24  ;;  %p2324_p7 = scmp.ge.s32.totalorder %s2931_s19, 1 }
  0x12   : > { %p77_p8 = scmp.lt.s32.totalorder %s2931_s19, 3  ;;  %p2325_p9 = scmp.ne.s32.totalorder %s3001_s0, 0 }
  0x13   : > { %p2690_p10 = scmp.eq.s32.totalorder %s3001_s0, 0  ;;  %s3229_s2 = sld [smem:[#allocation19_spill]] }
  0x14   : > { %p78_p11 = pnand %p2324_p7, %p77_p8  ;;  %s2946_s30 = smov [#allocation6]  }
  0x15   : > { %s90_s4 = sshll.u32 %s2946_s30, 4  ;;  %s2947_s5 = smov 64   ;;  %s91_s4 = int_to_ptr.vmem [resolvable:$true] %s90_s4 }
  0x16   : > { %p2682_p12 = pneg %p78_p11  ;;  %s2948_s6 = smov 4  }
  0x17   : > { %106 = sbr.rel (%p78_p11) target bundleno = 345 (0x159), region = 24 }
  0x18   : > { %p2683_p13 = pnand %p2690_p10, %p2682_p12 }
  0x19   : > { %s88_s29 = sshll.u32 %s3229_s2, 4  ;;  %s89_s29 = int_to_ptr.hbm [resolvable:$true] %s88_s29 }
  0x1a   : > { %2685 = dma.hbm_to_vmem [thread:$0]  (!%p2683_p13), %s89_s29, 1024, %s91_s4, [#allocation7], %s2947_s5, %s2947_s5, %s2948_s6  }
  0x1c   : > { %2908 = dma.done.wait (%p2690_p10), [#allocation7], 1024  }
  0x1d   : > { %2910 = vsyncadd (%p2690_p10), [#allocation7], 4294966272  ;;  %s3223_s7 = sand.u32 1, %s2923_s17   ;;  %126 = sbr.rel (%p2325_p9) target bundleno = 74 (0x4a), region = 32 }
  0x1e   : > { %s2328_s8 = sshll.u32 %s3223_s7, 7  ;;  %s3046_s10 = smov (!%p2325_p9), 0  }
  0x1f   : > { %s3042_s9 = scalar_lea.vmem [#allocation9], %s2328_s8 }
  0x22 LB: >> { %s133_s11 = sld [smem:[#allocation5 + %s2935_s10]]  ;;  %s139_s12 = sshrl.u32 %s2935_s10, 3  ;;  %s2935_s10 = sphi %s3046_s10, %s132_s10  }
  0x23   : >> { %s140_s13 = sand.u32 7, %s2935_s10   ;;  %s2331_s14 = sshll.u32 %s139_s12, 4 }
  0x24   : >> { %s142_s15 = sadd.s32 %s2331_s14, %s140_s13  ;;  %s144_s8 = scalar_lea.sflag [#allocation3], %s2935_s10 }
  0x25   : >> { %s143_s20 = scalar_lea.vmem [#allocation2], %s142_s15  ;;  %s2805_s15 = scalar_lea.hbm %s3220_s1, 512 }
  0x26   : >> { %s3054_s22 = sshll.u32 %s143_s20, 4  ;;  %s148_s22 = int_to_ptr.vmem [resolvable:$true] %s3054_s22 }
  0x28   : >> { %s134_s23 = sshrl.u32 %s133_s11, 3  ;;  %s135_s27 = sand.u32 7, %s133_s11  }
  0x29   : >> { %s2330_s28 = sshll.u32 %s134_s23, 4 }
  0x2a   : >> { %s137_s29 = sadd.s32 %s2330_s28, %s135_s27 }
  0x2b   : >> { %s138_s5 = scalar_lea.hbm %s3220_s1, %s137_s29 }
  0x2c   : >> { %s3060_s6 = sshll.u32 %s138_s5, 4  ;;  %s146_s6 = int_to_ptr.hbm [resolvable:$true] %s3060_s6 }
  0x2d   : >> { %s2801_s12 = sshra.s32 %s146_s6, 4  ;;  %s2802_s12 = int_to_ptr.hbm [resolvable:$true] %s2801_s12 }
  0x2e   : >> { %s2803_s13 = scalar_lea.hbm %s2802_s12, 2  ;;  %p2806_p1 = scmp.lt.s32.totalorder %s2802_s12, %s3220_s1 }
  0x2f   : >> { %p2804_p0 = scmp.ne.s32.totalorder %s2802_s12, %s2803_s13  ;;  %p2807_p2 = scmp.lt.s32.totalorder %s2805_s15, %s2803_s13 }
  0x31   : >> { %p2808_p3 = por %p2807_p2, %p2806_p1 }
  0x33   : >> { %p2809_p4 = pnand %p2808_p3, %p2804_p0 }
  0x35   : >> { %2812 = shalt.err (!%p2809_p4)  }
  0x36   : >> { %s2813_s27 = sshra.s32 %s148_s22, 4  ;;  %s2949_s29 = smov [#allocation2]   ;;  %s2814_s27 = int_to_ptr.vmem [resolvable:$true] %s2813_s27 }
  0x37   : >> { %s2815_s28 = scalar_lea.vmem %s2814_s27, 2  ;;  %s2817_s30 = scalar_lea.vmem %s2949_s29, 512 }
  0x38   : >> { %p2816_p7 = scmp.ne.s32.totalorder %s2814_s27, %s2815_s28  ;;  %p2818_p8 = scmp.lt.s32.totalorder %s2814_s27, [#allocation2] }
  0x39   : >> { %p2819_p9 = scmp.lt.s32.totalorder %s2817_s30, %s2815_s28 }
  0x3b   : >> { %p2820_p10 = por %p2819_p9, %p2818_p8 }
  0x3d   : >> { %p2821_p11 = pnand %p2820_p10, %p2816_p7 }
  0x3f   : >> { %2824 = shalt.err (!%p2821_p11)  }
  0x40   : >> { %s2950_s4 = smov 128   ;;  %s2951_s5 = smov 1  }
  0x41   : >> { %152 = dma.hbm_to_vmem [thread:$0]  %s146_s6, 32, %s148_s22, %s144_s8, %s2950_s4, %s2950_s4, %s2951_s5 }
  0x42   : >> { %s132_s10 = sadd.s32 1, %s2935_s10  }
  0x43   : >> { %p129_p12 = scmp.ge.s32.totalorder %s132_s10, 128  }
  0x45   : > { %131 = sbr.rel (!%p129_p12) target bundleno = 34 (0x22), region = 353 }
  0x4a PF: > { %s153_s12 = sadd.s32 1, %s3001_s0 }
  0x4b   : > { %p2332_p13 = scmp.ge.s32.totalorder %s153_s12, 2 }
  0x4c   : > { %p158_p0 = scmp.lt.s32.totalorder (!%p2332_p13), %s153_s12, 0  ;;  %s159_s13 = ssub.s32 (!%p2332_p13), 0, %s153_s12 }
  0x4d   : > { %157 = sbr.rel (%p2332_p13) target bundleno = 135 (0x87), region = 43  ;;  %s2333_s14 = smin.u32 (!%p2332_p13), %s159_s13, %s153_s12 }
  0x4e   : > { %s2640_s11 = sshll.u32 (!%p2332_p13), %s3001_s0, 7  ;;  %s161_s15 = sand.u32 (!%p2332_p13), 1, %s2333_s14  }
  0x4f   : > { %s3083_s20 = sadd.s32 (!%p2332_p13), 128, %s2640_s11  ;;  %s162_s22 = ssub.s32 (!%p2332_p13), 0, %s161_s15 }
  0x50   : > { %3230 = sst [smem:[#allocation17_spill]] (!%p2332_p13), %s3083_s20  ;;  %s3087_s10 = smov (!%p2332_p13), 0  }
  0x52   : > { %s3241_s22 = smov (!%p158_p0, %s162_s22), %s161_s15 }
  0x53   : > { %p2335_p1 = scmp.lt.s32.totalorder %s3241_s22, 0  ;;  %s168_s6 = sadd.s32 2, %s3241_s22 }
  0x55   : > { %s3243_s6 = smov (!%p2335_p1, %s168_s6), %s3241_s22 }
  0x56   : > { %3231 = sst [smem:[#allocation18_spill]] %s3243_s6 }
  0x57 LB: >> { %s3232_s6 = sld [smem:[#allocation18_spill]]  ;;  %s184_s28 = sshrl.u32 %s2939_s10, 3  ;;  %s2939_s10 = sphi %s3087_s10, %s176_s10  }
  0x58   : >> { %s3233_s20 = sld [smem:[#allocation17_spill]]  ;;  %s185_s30 = sand.u32 7, %s2939_s10  }
  0x59   : >> { %s2338_s4 = sshll.u32 %s184_s28, 4 }
  0x5a   : >> { %s187_s5 = sadd.s32 %s2338_s4, %s185_s30 }
  0x5d   : >> { %s2339_s8 = sshll.u32 %s3232_s6, 8  ;;  %s2340_s23 = sshll.u32 %s3232_s6, 7 }
  0x5e   : >> { %s177_s27 = sadd.s32 %s2939_s10, %s3233_s20  ;;  %s3099_s12 = sadd.s32 %s2939_s10, %s2340_s23 }
  0x5f   : >> { %s178_s29 = sld [smem:[#allocation5 + %s177_s27]]  ;;  %s189_s13 = sadd.s32 %s2339_s8, %s187_s5 }
  0x60   : >> { %s190_s14 = scalar_lea.vmem [#allocation2], %s189_s13  ;;  %s193_s23 = scalar_lea.sflag [#allocation3], %s3099_s12 }
  0x61   : >> { %s3101_s11 = sshll.u32 %s190_s14, 4  ;;  %s197_s11 = int_to_ptr.vmem [resolvable:$true] %s3101_s11 }
  0x65   : >> { %s179_s15 = sshrl.u32 %s178_s29, 3  ;;  %s180_s22 = sand.u32 7, %s178_s29  }
  0x66   : >> { %s2337_s7 = sshll.u32 %s179_s15, 4 }
  0x67   : >> { %s182_s2 = sadd.s32 %s2337_s7, %s180_s22  ;;  %s2829_s7 = scalar_lea.hbm %s3220_s1, 512 }
  0x68   : >> { %s183_s20 = scalar_lea.hbm %s3220_s1, %s182_s2 }
  0x69   : >> { %s3107_s27 = sshll.u32 %s183_s20, 4  ;;  %s195_s27 = int_to_ptr.hbm [resolvable:$true] %s3107_s27 }
  0x6a   : >> { %s2825_s8 = sshra.s32 %s195_s27, 4  ;;  %s2826_s8 = int_to_ptr.hbm [resolvable:$true] %s2825_s8 }
  0x6b   : >> { %s2827_s28 = scalar_lea.hbm %s2826_s8, 2  ;;  %p2830_p3 = scmp.lt.s32.totalorder %s2826_s8, %s3220_s1 }
  0x6c   : >> { %p2828_p2 = scmp.ne.s32.totalorder %s2826_s8, %s2827_s28  ;;  %p2831_p4 = scmp.lt.s32.totalorder %s2829_s7, %s2827_s28 }
  0x6e   : >> { %p2832_p7 = por %p2831_p4, %p2830_p3 }
  0x70   : >> { %p2833_p8 = pnand %p2832_p7, %p2828_p2 }
  0x72   : >> { %2836 = shalt.err (!%p2833_p8)  }
  0x73   : >> { %s2837_s2 = sshra.s32 %s197_s11, 4  ;;  %s2952_s20 = smov [#allocation2]   ;;  %s2838_s2 = int_to_ptr.vmem [resolvable:$true] %s2837_s2 }
  0x74   : >> { %s2839_s24 = scalar_lea.vmem %s2838_s2, 2  ;;  %s2841_s6 = scalar_lea.vmem %s2952_s20, 512 }
  0x75   : >> { %p2840_p9 = scmp.ne.s32.totalorder %s2838_s2, %s2839_s24  ;;  %p2842_p10 = scmp.lt.s32.totalorder %s2838_s2, [#allocation2] }
  0x76   : >> { %p2843_p11 = scmp.lt.s32.totalorder %s2841_s6, %s2839_s24 }
  0x78   : >> { %p2844_p12 = por %p2843_p11, %p2842_p10 }
  0x7a   : >> { %p2845_p13 = pnand %p2844_p12, %p2840_p9 }
  0x7c   : >> { %2848 = shalt.err (!%p2845_p13)  }
  0x7d   : >> { %s2953_s12 = smov 128   ;;  %s2954_s13 = smov 1  }
  0x7e   : >> { %201 = dma.hbm_to_vmem [thread:$0]  %s195_s27, 32, %s197_s11, %s193_s23, %s2953_s12, %s2953_s12, %s2954_s13 }
  0x7f   : >> { %s176_s10 = sadd.s32 1, %s2939_s10  }
  0x80   : >> { %p173_p0 = scmp.ge.s32.totalorder %s176_s10, 128  }
  0x82   : > { %175 = sbr.rel (!%p173_p0) target bundleno = 87 (0x57), region = 364 }
  0x87 PF: > { %p202_p1 = scmp.lt.s32.totalorder %s3001_s0, 0  ;;  %s203_s14 = ssub.s32 0, %s3001_s0 }
  0x88   : > { %s2341_s15 = smin.u32 %s3001_s0, %s203_s14  ;;  %s2941_s11 = smov 0  }
  0x89   : > { %s205_s22 = sand.u32 1, %s2341_s15  }
  0x8a   : > { %s206_s8 = ssub.s32 0, %s205_s22 }
  0x8b   : > { %s3245_s8 = smov (!%p202_p1, %s206_s8), %s205_s22 }
  0x8c   : > { %p2343_p2 = scmp.lt.s32.totalorder %s3245_s8, 0  ;;  %s212_s28 = sadd.s32 2, %s3245_s8 }
  0x8e   : > { %s3247_s28 = smov (!%p2343_p2, %s212_s28), %s3245_s8 }
  0x8f LB: >> { %s2344_s10 = sshll.u32 %s3247_s28, 7  ;;  %s2943_s11 = sphi %s2941_s11, %s220_s11  }
  0x90   : >> { %s224_s27 = sadd.s32 %s2943_s11, %s2344_s10 }
  0x91   : >> { %s225_s23 = scalar_lea.sflag [#allocation3], %s224_s27 }
  0x92   : >> { %2911 = dma.done.wait %s225_s23, 32 }
  0x93   : >> { %2912 = vsyncadd %s225_s23, 4294967264  ;;  %s220_s11 = sadd.s32 1, %s2943_s11  }
  0x94   : >> { %p217_p3 = scmp.ge.s32.totalorder %s220_s11, 128  }
  0x95   : > { %v2650_v0 = vld [vmem:[#allocation6 + $0x38] sm:$0xff] (%p217_p3)  ;;  %v2649_v1 = vld [vmem:[#allocation6 + $0x30] sm:$0xff] (%p217_p3)  ;;  %v2648_v2 = vld [vmem:[#allocation6 + $0x28] sm:$0xff] (%p217_p3)  ;;  %s2642_s30 = sshll.u32 (%p217_p3), %s3247_s28, 8  ;;  %s2651_s7 = sshll.u32 (%p217_p3), %s3001_s0, 7 }
  0x96   : > { %219 = sbr.rel (!%p217_p3) target bundleno = 143 (0x8f), region = 375  ;;  %335 = vmatpush.bf16.msra.mxu0 (%p217_p3), %v2650_v0  ;;  %2652 = vmatpush.bf16.msra.mxu1 (%p217_p3), %v2650_v0  ;;  %v2647_v3 = vld [vmem:[#allocation6 + $0x20] sm:$0xff] (%p217_p3)  ;;  %v2646_v4 = vld [vmem:[#allocation6 + $0x18] sm:$0xff] (%p217_p3)  ;;  %v2645_v5 = vld [vmem:[#allocation6 + $0x10] sm:$0xff] (%p217_p3)  ;;  %s3135_s29 = scalar_lea.vmem (%p217_p3), [#allocation2], %s2642_s30 }
  0x97   : > { %2653 = vmatpush.bf16.msra.mxu2 (%p217_p3), %v2650_v0  ;;  %2654 = vmatpush.bf16.msra.mxu3 (%p217_p3), %v2650_v0  ;;  %v2644_v6 = vld [vmem:[#allocation6 + $0x8] sm:$0xff] (%p217_p3)  ;;  %v2643_v7 = vld [vmem:[#allocation6] sm:$0xff] (%p217_p3)  ;;  %v234_v9 = vld [vmem:[%s3135_s29 + $0x18] sm:$0xff] (%p217_p3)  ;;  %s428_s2 = scalar_lea.hbm (%p217_p3), %s3222_s3, %s2651_s7  ;;  %s429_s0 = sshll.u32 (%p217_p3), %s3042_s9, 4  ;;  %s430_s0 = int_to_ptr.vmem [resolvable:$true] %s429_s0 }
  0x98   : > { %v232_v8 = vld [vmem:[%s3135_s29 + $0x8] sm:$0xff] (%p217_p3)  ;;  %v242_v11 = vld [vmem:[%s3135_s29 + $0x58] sm:$0xff] (%p217_p3)  ;;  %v231_v32 = vld [vmem:[%s3135_s29] sm:$0xff] (%p217_p3)  ;;  %s431_s24 = sshll.u32 (%p217_p3), %s428_s2, 4  ;;  %s3234_s20 = sand.u32 (%p217_p3), 1, %s2923_s17   ;;  %s432_s24 = int_to_ptr.hbm [resolvable:$true] %s431_s24 }
  0x99   : > { %v240_v10 = vld [vmem:[%s3135_s29 + $0x48] sm:$0xff] (%p217_p3)  ;;  %v250_v13 = vld [vmem:[%s3135_s29 + $0x98] sm:$0xff] (%p217_p3)  ;;  %v263_v16 = vpack.c.bf16 (%p217_p3), %v234_v9, %v232_v8  ;;  %v239_v33 = vld [vmem:[%s3135_s29 + $0x40] sm:$0xff] (%p217_p3)  ;;  %s417_s6 = scalar_lea.sflag (%p217_p3), [#allocation8], %s3234_s20  ;;  %s2863_s12 = sshra.s32 (%p217_p3), %s432_s24, 4  ;;  %s2864_s12 = int_to_ptr.hbm [resolvable:$true] %s2863_s12 }
  0x9a   : > { %336 = vmatpush.bf16.msra.mxu0 (%p217_p3), %v2649_v1  ;;  %2655 = vmatpush.bf16.msra.mxu1 (%p217_p3), %v2649_v1  ;;  %v248_v12 = vld [vmem:[%s3135_s29 + $0x88] sm:$0xff] (%p217_p3)  ;;  %v258_v15 = vld [vmem:[%s3135_s29 + $0xd8] sm:$0xff] (%p217_p3)  ;;  %v265_v17 = vpack.c.bf16 (%p217_p3), %v242_v11, %v240_v10  ;;  %v247_v38 = vld [vmem:[%s3135_s29 + $0x80] sm:$0xff] (%p217_p3)  ;;  %s2865_s13 = scalar_lea.hbm (%p217_p3), %s2864_s12, 128  ;;  %s2869_s22 = scalar_lea.hbm (%p217_p3), %s3222_s3, 256 }
  0x9b   : > { %2656 = vmatpush.bf16.msra.mxu2 %v2649_v1  ;;  %2657 = vmatpush.bf16.msra.mxu3 %v2649_v1  ;;  %v256_v14 = vld [vmem:[%s3135_s29 + $0xc8] sm:$0xff]  ;;  %v267_v18 = vpack.c.bf16 %v250_v13, %v248_v12  ;;  %v238_v21 = vld [vmem:[%s3135_s29 + $0x38] sm:$0xff]  ;;  %v255_v39 = vld [vmem:[%s3135_s29 + $0xc0] sm:$0xff]  ;;  %p2866_p4 = scmp.ne.s32.totalorder %s2864_s12, %s2865_s13  ;;  %p2870_p9 = scmp.lt.s32.totalorder %s2864_s12, %s3222_s3 }
  0x9c   : > { %v269_v19 = vpack.c.bf16 %v258_v15, %v256_v14  ;;  %v236_v20 = vld [vmem:[%s3135_s29 + $0x28] sm:$0xff]  ;;  %v246_v23 = vld [vmem:[%s3135_s29 + $0x78] sm:$0xff]  ;;  %v233_v40 = vld [vmem:[%s3135_s29 + $0x10] sm:$0xff]  ;;  %p2871_p10 = scmp.lt.s32.totalorder %s2869_s22, %s2865_s13 }
  0x9d   : > { %v244_v22 = vld [vmem:[%s3135_s29 + $0x68] sm:$0xff]  ;;  %v254_v25 = vld [vmem:[%s3135_s29 + $0xb8] sm:$0xff]  ;;  %v264_v28 = vpack.c.bf16 %v238_v21, %v236_v20  ;;  %v241_v41 = vld [vmem:[%s3135_s29 + $0x50] sm:$0xff]  ;;  %p2867_p7 = pnand %p2866_p4, %p3018_p5 }
  0x9e   : > { %337 = vmatpush.bf16.msra.mxu0 %v2648_v2  ;;  %2658 = vmatpush.bf16.msra.mxu1 %v2648_v2  ;;  %v252_v24 = vld [vmem:[%s3135_s29 + $0xa8] sm:$0xff]  ;;  %v262_v27 = vld [vmem:[%s3135_s29 + $0xf8] sm:$0xff]  ;;  %v266_v29 = vpack.c.bf16 %v246_v23, %v244_v22  ;;  %v249_v50 = vld [vmem:[%s3135_s29 + $0x90] sm:$0xff]  ;;  %p2872_p11 = por %p2871_p10, %p2870_p9 }
  0x9f   : > { %2659 = vmatpush.bf16.msra.mxu2 %v2648_v2  ;;  %2660 = vmatpush.bf16.msra.mxu3 %v2648_v2  ;;  %v260_v26 = vld [vmem:[%s3135_s29 + $0xe8] sm:$0xff]  ;;  %v268_v30 = vpack.c.bf16 %v254_v25, %v252_v24  ;;  %v257_v51 = vld [vmem:[%s3135_s29 + $0xd0] sm:$0xff]  ;;  %v235_v52 = vld [vmem:[%s3135_s29 + $0x20] sm:$0xff]  ;;  %p2868_p8 = pneg %p2867_p7 }
  0xa0   : > { %v270_v31 = vpack.c.bf16 %v262_v27, %v260_v26  ;;  %v243_v53 = vld [vmem:[%s3135_s29 + $0x60] sm:$0xff]  ;;  %v237_v0 = vld [vmem:[%s3135_s29 + $0x30] sm:$0xff] }
  0xa1   : > { %v251_v62 = vld [vmem:[%s3135_s29 + $0xa0] sm:$0xff]  ;;  %v245_v1 = vld [vmem:[%s3135_s29 + $0x70] sm:$0xff]  ;;  %p2873_p12 = pnand %p2872_p11, %p2868_p8 }
  0xa2   : > { %338 = vmatpush.bf16.msra.mxu0 %v2647_v3  ;;  %2661 = vmatpush.bf16.msra.mxu1 %v2647_v3  ;;  %v259_v63 = vld [vmem:[%s3135_s29 + $0xe0] sm:$0xff]  ;;  %v253_v10 = vld [vmem:[%s3135_s29 + $0xb0] sm:$0xff] }
  0xa3   : > { %2662 = vmatpush.bf16.msra.mxu2 %v2647_v3  ;;  %2663 = vmatpush.bf16.msra.mxu3 %v2647_v3  ;;  %v261_v11 = vld [vmem:[%s3135_s29 + $0xf0] sm:$0xff] }
  0xa6   : > { %339 = vmatpush.bf16.msra.mxu0 %v2646_v4  ;;  %2664 = vmatpush.bf16.msra.mxu1 %v2646_v4 }
  0xa7   : > { %2665 = vmatpush.bf16.msra.mxu2 %v2646_v4  ;;  %2666 = vmatpush.bf16.msra.mxu3 %v2646_v4 }
  0xaa   : > { %340 = vmatpush.bf16.msra.mxu0 %v2645_v5  ;;  %2667 = vmatpush.bf16.msra.mxu1 %v2645_v5 }
  0xab   : > { %2668 = vmatpush.bf16.msra.mxu2 %v2645_v5  ;;  %2669 = vmatpush.bf16.msra.mxu3 %v2645_v5 }
  0xae   : > { %341 = vmatpush.bf16.msra.mxu0 %v2644_v6  ;;  %2670 = vmatpush.bf16.msra.mxu1 %v2644_v6 }
  0xaf   : > { %2671 = vmatpush.bf16.msra.mxu2 %v2644_v6  ;;  %2672 = vmatpush.bf16.msra.mxu3 %v2644_v6 }
  0xb2   : > { %342 = vmatpush.bf16.msra.mxu0 %v2643_v7  ;;  %2673 = vmatpush.bf16.msra.mxu1 %v2643_v7 }
  0xb3   : > { %2674 = vmatpush.bf16.msra.mxu2 %v2643_v7  ;;  %2675 = vmatpush.bf16.msra.mxu3 %v2643_v7 }
  0xb5   : > { %343 = vmatmul.bf16.vlgmr.msra.gmra.mxu0 %v263_v16  ;;  %353 = vmatmul.bf16.vlgmr.msra.gmra.mxu1 %v265_v17 }
  0xb6   : > { %363 = vmatmul.bf16.vlgmr.msra.gmra.mxu2 %v267_v18  ;;  %373 = vmatmul.bf16.vlgmr.msra.gmra.mxu3 %v269_v19 }
  0xc5   : > { %348 = vmatmul.bf16.gmra.mxu0 %v264_v28  ;;  %358 = vmatmul.bf16.gmra.mxu1 %v266_v29 }
  0xc6   : > { %368 = vmatmul.bf16.gmra.mxu2 %v268_v30  ;;  %378 = vmatmul.bf16.gmra.mxu3 %v270_v31 }
 0x132   : > { %v344_v34 = vpop.f32.mrf.mxu0  ;;  %v354_v35 = vpop.f32.mrf.mxu1 }
 0x133   : > { %v384_v36 = vadd.f32 %v344_v34, %v231_v32  ;;  %v388_v37 = vadd.f32 %v354_v35, %v239_v33 }
 0x135   : > { %400 = vst [vmem:[%s3042_s9] sm:$0xff] %v384_v36 }
 0x136   : > { %404 = vst [vmem:[%s3042_s9 + $0x20] sm:$0xff] %v388_v37 }
 0x139   : > { %v364_v42 = vpop.f32.mrf.mxu2  ;;  %v374_v43 = vpop.f32.mrf.mxu3 }
 0x13a   : > { %v392_v44 = vadd.f32 %v364_v42, %v247_v38  ;;  %v396_v45 = vadd.f32 %v374_v43, %v255_v39  ;;  %v346_v46 = vpop.f32.mrf.mxu0  ;;  %v356_v47 = vpop.f32.mrf.mxu1 }
 0x13b   : > { %v385_v48 = vadd.f32 %v346_v46, %v233_v40  ;;  %v389_v49 = vadd.f32 %v356_v47, %v241_v41 }
 0x13c   : > { %408 = vst [vmem:[%s3042_s9 + $0x40] sm:$0xff] %v392_v44 }
 0x13d   : > { %412 = vst [vmem:[%s3042_s9 + $0x60] sm:$0xff] %v396_v45 }
 0x13e   : > { %401 = vst [vmem:[%s3042_s9 + $0x8] sm:$0xff] %v385_v48 }
 0x13f   : > { %405 = vst [vmem:[%s3042_s9 + $0x28] sm:$0xff] %v389_v49 }
 0x141   : > { %v366_v54 = vpop.f32.mrf.mxu2  ;;  %v376_v55 = vpop.f32.mrf.mxu3 }
 0x142   : > { %v393_v56 = vadd.f32 %v366_v54, %v249_v50  ;;  %v397_v57 = vadd.f32 %v376_v55, %v257_v51  ;;  %v349_v58 = vpop.f32.mrf.mxu0  ;;  %v359_v59 = vpop.f32.mrf.mxu1 }
 0x143   : > { %v386_v60 = vadd.f32 %v349_v58, %v235_v52  ;;  %v390_v61 = vadd.f32 %v359_v59, %v243_v53 }
 0x144   : > { %409 = vst [vmem:[%s3042_s9 + $0x48] sm:$0xff] %v393_v56 }
 0x145   : > { %413 = vst [vmem:[%s3042_s9 + $0x68] sm:$0xff] %v397_v57 }
 0x146   : > { %402 = vst [vmem:[%s3042_s9 + $0x10] sm:$0xff] %v386_v60 }
 0x147   : > { %406 = vst [vmem:[%s3042_s9 + $0x30] sm:$0xff] %v390_v61 }
 0x149   : > { %v369_v2 = vpop.f32.mrf.mxu2  ;;  %v379_v3 = vpop.f32.mrf.mxu3 }
 0x14a   : > { %v394_v4 = vadd.f32 %v369_v2, %v251_v62  ;;  %v398_v5 = vadd.f32 %v379_v3, %v259_v63  ;;  %v351_v6 = vpop.f32.mrf.mxu0  ;;  %v361_v7 = vpop.f32.mrf.mxu1 }
 0x14b   : > { %v387_v8 = vadd.f32 %v351_v6, %v237_v0  ;;  %v391_v9 = vadd.f32 %v361_v7, %v245_v1 }
 0x14c   : > { %410 = vst [vmem:[%s3042_s9 + $0x50] sm:$0xff] %v394_v4 }
 0x14d   : > { %414 = vst [vmem:[%s3042_s9 + $0x70] sm:$0xff] %v398_v5 }
 0x14e   : > { %403 = vst [vmem:[%s3042_s9 + $0x18] sm:$0xff] %v387_v8 }
 0x14f   : > { %407 = vst [vmem:[%s3042_s9 + $0x38] sm:$0xff] %v391_v9 }
 0x151   : > { %v371_v12 = vpop.f32.mrf.mxu2  ;;  %v381_v13 = vpop.f32.mrf.mxu3 }
 0x152   : > { %v395_v14 = vadd.f32 %v371_v12, %v253_v10  ;;  %v399_v15 = vadd.f32 %v381_v13, %v261_v11 }
 0x154   : > { %411 = vst [vmem:[%s3042_s9 + $0x58] sm:$0xff] %v395_v14 }
 0x155   : > { %415 = vst [vmem:[%s3042_s9 + $0x78] sm:$0xff] %v399_v15 }
 0x156   : > { %2876 = shalt.err (!%p2873_p12)
}
 0x157   : > { %s2955_s9 = smov 128   ;;  %s2956_s11 = smov 8  }
 0x158   : > { %2680 = dma.vmem_to_hbm [thread:$0]  (%p3018_p5), %s430_s0, 2048, %s432_s24, %s417_s6, %s2955_s9, %s2955_s9, %s2956_s11  }
 0x159 PF: > { %p2692_p13 = scmp.ge.s32.totalorder %s2931_s19, 2  ;;  %s446_s10 = sand.u32 1, %s2919_s16  }
 0x15a   : > { %s447_s27 = scalar_lea.sflag [#allocation8], %s446_s10 }
 0x15b   : > { %p2687_p0 = pnand %p2692_p13, %p3022_p6 }
 0x15d   : > { %p2688_p1 = pneg %p2687_p0 }
 0x15f   : > { %2914 = dma.done.wait (%p2688_p1), %s447_s27, 2048  }
 0x160   : > { %2916 = vsyncadd (%p2688_p1), %s447_s27, 4294965248  ;;  %s3235_s23 = sld [smem:[#allocation16_spill]]  ;;  %p22_p2 = scmp.ge.s32.totalorder %s3005_s21, 4  }
 0x161   : > { %s3236_s16 = smov %s2923_s17  ;;  %s3237_s17 = smov %s2927_s18 }
 0x162   : > { %s3239_s19 = smov %s3005_s21  ;;  %24 = sbr.rel (!%p22_p2) target bundleno = 10 (0xa), region = 386 }
 0x166   : > { %s3238_s18 = smov %s3235_s23 }
 0x167   :  { %453 = vsyncpa [#allocation7], 1 }
 0x168   :  { %455 = vsyncpa [#allocation7 + $0x1], 1 }
 0x169   :  { %456 = vsyncpa [#allocation8], 1 }
 0x16a   :  { %458 = vsyncpa [#allocation8 + $0x1], 1 }
 0x16b   :  { %459 = vsyncmov [#allocation3] }
 0x16e   :  { %s460_s19 = vpop.sfrf %459 }
 0x16f   :  { %p2384_p5 = scmp.ne.s32.totalorder %s460_s19, 0 }
 0x171   :  { %464 = shalt.err (%p2384_p5)  }
 0x172   :  { %466 = vsyncmov [#allocation3 + $0x1] }
 0x175   :  { %s467_s25 = vpop.sfrf %466 }
 0x176   :  { %p2385_p6 = scmp.ne.s32.totalorder %s467_s25, 0 }
 0x178   :  { %471 = shalt.err (%p2385_p6)  }
 0x179   :  { %473 = vsyncmov [#allocation3 + $0x2] }
 0x17c   :  { %s474_s26 = vpop.sfrf %473 }
 0x17d   :  { %p2386_p3 = scmp.ne.s32.totalorder %s474_s26, 0 }
 0x17f   :  { %478 = shalt.err (%p2386_p3)  }
 0x180   :  { %480 = vsyncmov [#allocation3 + $0x3] }
 0x183   :  { %s481_s30 = vpop.sfrf %480 }
 0x184   :  { %p2387_p4 = scmp.ne.s32.totalorder %s481_s30, 0 }
 0x186   :  { %485 = shalt.err (%p2387_p4)  }
 0x187   :  { %487 = vsyncmov [#allocation3 + $0x4] }
 0x18a   :  { %s488_s1 = vpop.sfrf %487 }
 0x18b   :  { %p2388_p7 = scmp.ne.s32.totalorder %s488_s1, 0 }
 0x18d   :  { %492 = shalt.err (%p2388_p7)  }
 0x18e   :  { %494 = vsyncmov [#allocation3 + $0x5] }
 0x191   :  { %s495_s3 = vpop.sfrf %494 }
 0x192   :  { %p2389_p8 = scmp.ne.s32.totalorder %s495_s3, 0 }
 0x194   :  { %499 = shalt.err (%p2389_p8)  }
 0x195   :  { %501 = vsyncmov [#allocation3 + $0x6] }
 0x198   :  { %s502_s16 = vpop.sfrf %501 }
 0x199   :  { %p2390_p9 = scmp.ne.s32.totalorder %s502_s16, 0 }
 0x19b   :  { %506 = shalt.err (%p2390_p9)  }
 0x19c   :  { %508 = vsyncmov [#allocation3 + $0x7] }
 0x19f   :  { %s509_s17 = vpop.sfrf %508 }
 0x1a0   :  { %p2391_p10 = scmp.ne.s32.totalorder %s509_s17, 0 }
 0x1a2   :  { %513 = shalt.err (%p2391_p10)  }
 0x1a3   :  { %515 = vsyncmov [#allocation3 + $0x8] }
 0x1a6   :  { %s516_s18 = vpop.sfrf %515 }
 0x1a7   :  { %p2392_p11 = scmp.ne.s32.totalorder %s516_s18, 0 }
 0x1a9   :  { %520 = shalt.err (%p2392_p11)  }
 0x1aa   :  { %522 = vsyncmov [#allocation3 + $0x9] }
 0x1ad   :  { %s523_s21 = vpop.sfrf %522 }
 0x1ae   :  { %p2393_p12 = scmp.ne.s32.totalorder %s523_s21, 0 }
 0x1b0   :  { %527 = shalt.err (%p2393_p12)  }
 0x1b1   :  { %529 = vsyncmov [#allocation3 + $0xa] }
 0x1b4   :  { %s530_s29 = vpop.sfrf %529 }
 0x1b5   :  { %p2394_p13 = scmp.ne.s32.totalorder %s530_s29, 0 }
 0x1b7   :  { %534 = shalt.err (%p2394_p13)  }
 0x1b8   :  { %536 = vsyncmov [#allocation3 + $0xb] }
 0x1bb   :  { %s537_s7 = vpop.sfrf %536 }
 0x1bc   :  { %p2395_p0 = scmp.ne.s32.totalorder %s537_s7, 0 }
 0x1be   :  { %541 = shalt.err (%p2395_p0)  }
 0x1bf   :  { %543 = vsyncmov [#allocation3 + $0xc] }
 0x1c2   :  { %s544_s4 = vpop.sfrf %543 }
 0x1c3   :  { %p2396_p1 = scmp.ne.s32.totalorder %s544_s4, 0 }
 0x1c5   :  { %548 = shalt.err (%p2396_p1)  }
 0x1c6   :  { %550 = vsyncmov [#allocation3 + $0xd] }
 0x1c9   :  { %s551_s5 = vpop.sfrf %550 }
 0x1ca   :  { %p2397_p2 = scmp.ne.s32.totalorder %s551_s5, 0 }
 0x1cc   :  { %555 = shalt.err (%p2397_p2)  }
 0x1cd   :  { %557 = vsyncmov [#allocation3 + $0xe] }
 0x1d0   :  { %s558_s2 = vpop.sfrf %557 }
 0x1d1   :  { %p2398_p5 = scmp.ne.s32.totalorder %s558_s2, 0 }
 0x1d3   :  { %562 = shalt.err (%p2398_p5)  }
 0x1d4   :  { %564 = vsyncmov [#allocation3 + $0xf] }
 0x1d7   :  { %s565_s0 = vpop.sfrf %564 }
 0x1d8   :  { %p2399_p6 = scmp.ne.s32.totalorder %s565_s0, 0 }
 0x1da   :  { %569 = shalt.err (%p2399_p6)  }
 0x1db   :  { %571 = vsyncmov [#allocation3 + $0x10] }
 0x1de   :  { %s572_s24 = vpop.sfrf %571 }
 0x1df   :  { %p2400_p3 = scmp.ne.s32.totalorder %s572_s24, 0 }
 0x1e1   :  { %576 = shalt.err (%p2400_p3)  }
 0x1e2   :  { %578 = vsyncmov [#allocation3 + $0x11] }
 0x1e5   :  { %s579_s20 = vpop.sfrf %578 }
 0x1e6   :  { %p2401_p4 = scmp.ne.s32.totalorder %s579_s20, 0 }
 0x1e8   :  { %583 = shalt.err (%p2401_p4)  }
 0x1e9   :  { %585 = vsyncmov [#allocation3 + $0x12] }
 0x1ec   :  { %s586_s6 = vpop.sfrf %585 }
 0x1ed   :  { %p2402_p7 = scmp.ne.s32.totalorder %s586_s6, 0 }
 0x1ef   :  { %590 = shalt.err (%p2402_p7)  }
 0x1f0   :  { %592 = vsyncmov [#allocation3 + $0x13] }
 0x1f3   :  { %s593_s12 = vpop.sfrf %592 }
 0x1f4   :  { %p2403_p8 = scmp.ne.s32.totalorder %s593_s12, 0 }
 0x1f6   :  { %597 = shalt.err (%p2403_p8)  }
 0x1f7   :  { %599 = vsyncmov [#allocation3 + $0x14] }
 0x1fa   :  { %s600_s13 = vpop.sfrf %599 }
 0x1fb   :  { %p2404_p9 = scmp.ne.s32.totalorder %s600_s13, 0 }
 0x1fd   :  { %604 = shalt.err (%p2404_p9)  }
 0x1fe   :  { %606 = vsyncmov [#allocation3 + $0x15] }
 0x201   :  { %s607_s14 = vpop.sfrf %606 }
 0x202   :  { %p2405_p10 = scmp.ne.s32.totalorder %s607_s14, 0 }
 0x204   :  { %611 = shalt.err (%p2405_p10)  }
 0x205   :  { %613 = vsyncmov [#allocation3 + $0x16] }
 0x208   :  { %s614_s15 = vpop.sfrf %613 }
 0x209   :  { %p2406_p11 = scmp.ne.s32.totalorder %s614_s15, 0 }
 0x20b   :  { %618 = shalt.err (%p2406_p11)  }
 0x20c   :  { %620 = vsyncmov [#allocation3 + $0x17] }
 0x20f   :  { %s621_s22 = vpop.sfrf %620 }
 0x210   :  { %p2407_p12 = scmp.ne.s32.totalorder %s621_s22, 0 }
 0x212   :  { %625 = shalt.err (%p2407_p12)  }
 0x213   :  { %627 = vsyncmov [#allocation3 + $0x18] }
 0x216   :  { %s628_s8 = vpop.sfrf %627 }
 0x217   :  { %p2408_p13 = scmp.ne.s32.totalorder %s628_s8, 0 }
 0x219   :  { %632 = shalt.err (%p2408_p13)  }
 0x21a   :  { %634 = vsyncmov [#allocation3 + $0x19] }
 0x21d   :  { %s635_s28 = vpop.sfrf %634 }
 0x21e   :  { %p2409_p0 = scmp.ne.s32.totalorder %s635_s28, 0 }
 0x220   :  { %639 = shalt.err (%p2409_p0)  }
 0x221   :  { %641 = vsyncmov [#allocation3 + $0x1a] }
 0x224   :  { %s642_s9 = vpop.sfrf %641 }
 0x225   :  { %p2410_p1 = scmp.ne.s32.totalorder %s642_s9, 0 }
 0x227   :  { %646 = shalt.err (%p2410_p1)  }
 0x228   :  { %648 = vsyncmov [#allocation3 + $0x1b] }
 0x22b   :  { %s649_s11 = vpop.sfrf %648 }
 0x22c   :  { %p2411_p2 = scmp.ne.s32.totalorder %s649_s11, 0 }
 0x22e   :  { %653 = shalt.err (%p2411_p2)  }
 0x22f   :  { %655 = vsyncmov [#allocation3 + $0x1c] }
 0x232   :  { %s656_s10 = vpop.sfrf %655 }
 0x233   :  { %p2412_p5 = scmp.ne.s32.totalorder %s656_s10, 0 }
 0x235   :  { %660 = shalt.err (%p2412_p5)  }
 0x236   :  { %662 = vsyncmov [#allocation3 + $0x1d] }
 0x239   :  { %s663_s27 = vpop.sfrf %662 }
 0x23a   :  { %p2413_p6 = scmp.ne.s32.totalorder %s663_s27, 0 }
 0x23c   :  { %667 = shalt.err (%p2413_p6)  }
 0x23d   :  { %669 = vsyncmov [#allocation3 + $0x1e] }
 0x240   :  { %s670_s23 = vpop.sfrf %669 }
 0x241   :  { %p2414_p3 = scmp.ne.s32.totalorder %s670_s23, 0 }
 0x243   :  { %674 = shalt.err (%p2414_p3)  }
 0x244   :  { %676 = vsyncmov [#allocation3 + $0x1f] }
 0x247   :  { %s677_s19 = vpop.sfrf %676 }
 0x248   :  { %p2415_p4 = scmp.ne.s32.totalorder %s677_s19, 0 }
 0x24a   :  { %681 = shalt.err (%p2415_p4)  }
 0x24b   :  { %683 = vsyncmov [#allocation3 + $0x20] }
 0x24e   :  { %s684_s25 = vpop.sfrf %683 }
 0x24f   :  { %p2416_p7 = scmp.ne.s32.totalorder %s684_s25, 0 }
 0x251   :  { %688 = shalt.err (%p2416_p7)  }
 0x252   :  { %690 = vsyncmov [#allocation3 + $0x21] }
 0x255   :  { %s691_s26 = vpop.sfrf %690 }
 0x256   :  { %p2417_p8 = scmp.ne.s32.totalorder %s691_s26, 0 }
 0x258   :  { %695 = shalt.err (%p2417_p8)  }
 0x259   :  { %697 = vsyncmov [#allocation3 + $0x22] }
 0x25c   :  { %s698_s30 = vpop.sfrf %697 }
 0x25d   :  { %p2418_p9 = scmp.ne.s32.totalorder %s698_s30, 0 }
 0x25f   :  { %702 = shalt.err (%p2418_p9)  }
 0x260   :  { %704 = vsyncmov [#allocation3 + $0x23] }
 0x263   :  { %s705_s1 = vpop.sfrf %704 }
 0x264   :  { %p2419_p10 = scmp.ne.s32.totalorder %s705_s1, 0 }
 0x266   :  { %709 = shalt.err (%p2419_p10)  }
 0x267   :  { %711 = vsyncmov [#allocation3 + $0x24] }
 0x26a   :  { %s712_s3 = vpop.sfrf %711 }
 0x26b   :  { %p2420_p11 = scmp.ne.s32.totalorder %s712_s3, 0 }
 0x26d   :  { %716 = shalt.err (%p2420_p11)  }
 0x26e   :  { %718 = vsyncmov [#allocation3 + $0x25] }
 0x271   :  { %s719_s16 = vpop.sfrf %718 }
 0x272   :  { %p2421_p12 = scmp.ne.s32.totalorder %s719_s16, 0 }
 0x274   :  { %723 = shalt.err (%p2421_p12)  }
 0x275   :  { %725 = vsyncmov [#allocation3 + $0x26] }
 0x278   :  { %s726_s17 = vpop.sfrf %725 }
 0x279   :  { %p2422_p13 = scmp.ne.s32.totalorder %s726_s17, 0 }
 0x27b   :  { %730 = shalt.err (%p2422_p13)  }
 0x27c   :  { %732 = vsyncmov [#allocation3 + $0x27] }
 0x27f   :  { %s733_s18 = vpop.sfrf %732 }
 0x280   :  { %p2423_p0 = scmp.ne.s32.totalorder %s733_s18, 0 }
 0x282   :  { %737 = shalt.err (%p2423_p0)  }
 0x283   :  { %739 = vsyncmov [#allocation3 + $0x28] }
 0x286   :  { %s740_s21 = vpop.sfrf %739 }
 0x287   :  { %p2424_p1 = scmp.ne.s32.totalorder %s740_s21, 0 }
 0x289   :  { %744 = shalt.err (%p2424_p1)  }
 0x28a   :  { %746 = vsyncmov [#allocation3 + $0x29] }
 0x28d   :  { %s747_s29 = vpop.sfrf %746 }
 0x28e   :  { %p2425_p2 = scmp.ne.s32.totalorder %s747_s29, 0 }
 0x290   :  { %751 = shalt.err (%p2425_p2)  }
 0x291   :  { %753 = vsyncmov [#allocation3 + $0x2a] }
 0x294   :  { %s754_s7 = vpop.sfrf %753 }
 0x295   :  { %p2426_p5 = scmp.ne.s32.totalorder %s754_s7, 0 }
 0x297   :  { %758 = shalt.err (%p2426_p5)  }
 0x298   :  { %760 = vsyncmov [#allocation3 + $0x2b] }
 0x29b   :  { %s761_s4 = vpop.sfrf %760 }
 0x29c   :  { %p2427_p6 = scmp.ne.s32.totalorder %s761_s4, 0 }
 0x29e   :  { %765 = shalt.err (%p2427_p6)  }
 0x29f   :  { %767 = vsyncmov [#allocation3 + $0x2c] }
 0x2a2   :  { %s768_s5 = vpop.sfrf %767 }
 0x2a3   :  { %p2428_p3 = scmp.ne.s32.totalorder %s768_s5, 0 }
 0x2a5   :  { %772 = shalt.err (%p2428_p3)  }
 0x2a6   :  { %774 = vsyncmov [#allocation3 + $0x2d] }
 0x2a9   :  { %s775_s2 = vpop.sfrf %774 }
 0x2aa   :  { %p2429_p4 = scmp.ne.s32.totalorder %s775_s2, 0 }
 0x2ac   :  { %779 = shalt.err (%p2429_p4)  }
 0x2ad   :  { %781 = vsyncmov [#allocation3 + $0x2e] }
 0x2b0   :  { %s782_s0 = vpop.sfrf %781 }
 0x2b1   :  { %p2430_p7 = scmp.ne.s32.totalorder %s782_s0, 0 }
 0x2b3   :  { %786 = shalt.err (%p2430_p7)  }
 0x2b4   :  { %788 = vsyncmov [#allocation3 + $0x2f] }
 0x2b7   :  { %s789_s24 = vpop.sfrf %788 }
 0x2b8   :  { %p2431_p8 = scmp.ne.s32.totalorder %s789_s24, 0 }
 0x2ba   :  { %793 = shalt.err (%p2431_p8)  }
 0x2bb   :  { %795 = vsyncmov [#allocation3 + $0x30] }
 0x2be   :  { %s796_s20 = vpop.sfrf %795 }
 0x2bf   :  { %p2432_p9 = scmp.ne.s32.totalorder %s796_s20, 0 }
 0x2c1   :  { %800 = shalt.err (%p2432_p9)  }
 0x2c2   :  { %802 = vsyncmov [#allocation3 + $0x31] }
 0x2c5   :  { %s803_s6 = vpop.sfrf %802 }
 0x2c6   :  { %p2433_p10 = scmp.ne.s32.totalorder %s803_s6, 0 }
 0x2c8   :  { %807 = shalt.err (%p2433_p10)  }
 0x2c9   :  { %809 = vsyncmov [#allocation3 + $0x32] }
 0x2cc   :  { %s810_s12 = vpop.sfrf %809 }
 0x2cd   :  { %p2434_p11 = scmp.ne.s32.totalorder %s810_s12, 0 }
 0x2cf   :  { %814 = shalt.err (%p2434_p11)  }
 0x2d0   :  { %816 = vsyncmov [#allocation3 + $0x33] }
 0x2d3   :  { %s817_s13 = vpop.sfrf %816 }
 0x2d4   :  { %p2435_p12 = scmp.ne.s32.totalorder %s817_s13, 0 }
 0x2d6   :  { %821 = shalt.err (%p2435_p12)  }
 0x2d7   :  { %823 = vsyncmov [#allocation3 + $0x34] }
 0x2da   :  { %s824_s14 = vpop.sfrf %823 }
 0x2db   :  { %p2436_p13 = scmp.ne.s32.totalorder %s824_s14, 0 }
 0x2dd   :  { %828 = shalt.err (%p2436_p13)  }
 0x2de   :  { %830 = vsyncmov [#allocation3 + $0x35] }
 0x2e1   :  { %s831_s15 = vpop.sfrf %830 }
 0x2e2   :  { %p2437_p0 = scmp.ne.s32.totalorder %s831_s15, 0 }
 0x2e4   :  { %835 = shalt.err (%p2437_p0)  }
 0x2e5   :  { %837 = vsyncmov [#allocation3 + $0x36] }
 0x2e8   :  { %s838_s22 = vpop.sfrf %837 }
 0x2e9   :  { %p2438_p1 = scmp.ne.s32.totalorder %s838_s22, 0 }
 0x2eb   :  { %842 = shalt.err (%p2438_p1)  }
 0x2ec   :  { %844 = vsyncmov [#allocation3 + $0x37] }
 0x2ef   :  { %s845_s8 = vpop.sfrf %844 }
 0x2f0   :  { %p2439_p2 = scmp.ne.s32.totalorder %s845_s8, 0 }
 0x2f2   :  { %849 = shalt.err (%p2439_p2)  }
 0x2f3   :  { %851 = vsyncmov [#allocation3 + $0x38] }
 0x2f6   :  { %s852_s28 = vpop.sfrf %851 }
 0x2f7   :  { %p2440_p5 = scmp.ne.s32.totalorder %s852_s28, 0 }
 0x2f9   :  { %856 = shalt.err (%p2440_p5)  }
 0x2fa   :  { %858 = vsyncmov [#allocation3 + $0x39] }
 0x2fd   :  { %s859_s9 = vpop.sfrf %858 }
 0x2fe   :  { %p2441_p6 = scmp.ne.s32.totalorder %s859_s9, 0 }
 0x300   :  { %863 = shalt.err (%p2441_p6)  }
 0x301   :  { %865 = vsyncmov [#allocation3 + $0x3a] }
 0x304   :  { %s866_s11 = vpop.sfrf %865 }
 0x305   :  { %p2442_p3 = scmp.ne.s32.totalorder %s866_s11, 0 }
 0x307   :  { %870 = shalt.err (%p2442_p3)  }
 0x308   :  { %872 = vsyncmov [#allocation3 + $0x3b] }
 0x30b   :  { %s873_s10 = vpop.sfrf %872 }
 0x30c   :  { %p2443_p4 = scmp.ne.s32.totalorder %s873_s10, 0 }
 0x30e   :  { %877 = shalt.err (%p2443_p4)  }
 0x30f   :  { %879 = vsyncmov [#allocation3 + $0x3c] }
 0x312   :  { %s880_s27 = vpop.sfrf %879 }
 0x313   :  { %p2444_p7 = scmp.ne.s32.totalorder %s880_s27, 0 }
 0x315   :  { %884 = shalt.err (%p2444_p7)  }
 0x316   :  { %886 = vsyncmov [#allocation3 + $0x3d] }
 0x319   :  { %s887_s23 = vpop.sfrf %886 }
 0x31a   :  { %p2445_p8 = scmp.ne.s32.totalorder %s887_s23, 0 }
 0x31c   :  { %891 = shalt.err (%p2445_p8)  }
 0x31d   :  { %893 = vsyncmov [#allocation3 + $0x3e] }
 0x320   :  { %s894_s19 = vpop.sfrf %893 }
 0x321   :  { %p2446_p9 = scmp.ne.s32.totalorder %s894_s19, 0 }
 0x323   :  { %898 = shalt.err (%p2446_p9)  }
 0x324   :  { %900 = vsyncmov [#allocation3 + $0x3f] }
 0x327   :  { %s901_s25 = vpop.sfrf %900 }
 0x328   :  { %p2447_p10 = scmp.ne.s32.totalorder %s901_s25, 0 }
 0x32a   :  { %905 = shalt.err (%p2447_p10)  }
 0x32b   :  { %907 = vsyncmov [#allocation3 + $0x40] }
 0x32e   :  { %s908_s26 = vpop.sfrf %907 }
 0x32f   :  { %p2448_p11 = scmp.ne.s32.totalorder %s908_s26, 0 }
 0x331   :  { %912 = shalt.err (%p2448_p11)  }
 0x332   :  { %914 = vsyncmov [#allocation3 + $0x41] }
 0x335   :  { %s915_s30 = vpop.sfrf %914 }
 0x336   :  { %p2449_p12 = scmp.ne.s32.totalorder %s915_s30, 0 }
 0x338   :  { %919 = shalt.err (%p2449_p12)  }
 0x339   :  { %921 = vsyncmov [#allocation3 + $0x42] }
 0x33c   :  { %s922_s1 = vpop.sfrf %921 }
 0x33d   :  { %p2450_p13 = scmp.ne.s32.totalorder %s922_s1, 0 }
 0x33f   :  { %926 = shalt.err (%p2450_p13)  }
 0x340   :  { %928 = vsyncmov [#allocation3 + $0x43] }
 0x343   :  { %s929_s3 = vpop.sfrf %928 }
 0x344   :  { %p2451_p0 = scmp.ne.s32.totalorder %s929_s3, 0 }
 0x346   :  { %933 = shalt.err (%p2451_p0)  }
 0x347   :  { %935 = vsyncmov [#allocation3 + $0x44] }
 0x34a   :  { %s936_s16 = vpop.sfrf %935 }
 0x34b   :  { %p2452_p1 = scmp.ne.s32.totalorder %s936_s16, 0 }
 0x34d   :  { %940 = shalt.err (%p2452_p1)  }
 0x34e   :  { %942 = vsyncmov [#allocation3 + $0x45] }
 0x351   :  { %s943_s17 = vpop.sfrf %942 }
 0x352   :  { %p2453_p2 = scmp.ne.s32.totalorder %s943_s17, 0 }
 0x354   :  { %947 = shalt.err (%p2453_p2)  }
 0x355   :  { %949 = vsyncmov [#allocation3 + $0x46] }
 0x358   :  { %s950_s18 = vpop.sfrf %949 }
 0x359   :  { %p2454_p5 = scmp.ne.s32.totalorder %s950_s18, 0 }
 0x35b   :  { %954 = shalt.err (%p2454_p5)  }
 0x35c   :  { %956 = vsyncmov [#allocation3 + $0x47] }
 0x35f   :  { %s957_s21 = vpop.sfrf %956 }
 0x360   :  { %p2455_p6 = scmp.ne.s32.totalorder %s957_s21, 0 }
 0x362   :  { %961 = shalt.err (%p2455_p6)  }
 0x363   :  { %963 = vsyncmov [#allocation3 + $0x48] }
 0x366   :  { %s964_s29 = vpop.sfrf %963 }
 0x367   :  { %p2456_p3 = scmp.ne.s32.totalorder %s964_s29, 0 }
 0x369   :  { %968 = shalt.err (%p2456_p3)  }
 0x36a   :  { %970 = vsyncmov [#allocation3 + $0x49] }
 0x36d   :  { %s971_s7 = vpop.sfrf %970 }
 0x36e   :  { %p2457_p4 = scmp.ne.s32.totalorder %s971_s7, 0 }
 0x370   :  { %975 = shalt.err (%p2457_p4)  }
 0x371   :  { %977 = vsyncmov [#allocation3 + $0x4a] }
 0x374   :  { %s978_s4 = vpop.sfrf %977 }
 0x375   :  { %p2458_p7 = scmp.ne.s32.totalorder %s978_s4, 0 }
 0x377   :  { %982 = shalt.err (%p2458_p7)  }
 0x378   :  { %984 = vsyncmov [#allocation3 + $0x4b] }
 0x37b   :  { %s985_s5 = vpop.sfrf %984 }
 0x37c   :  { %p2459_p8 = scmp.ne.s32.totalorder %s985_s5, 0 }
 0x37e   :  { %989 = shalt.err (%p2459_p8)  }
 0x37f   :  { %991 = vsyncmov [#allocation3 + $0x4c] }
 0x382   :  { %s992_s2 = vpop.sfrf %991 }
 0x383   :  { %p2460_p9 = scmp.ne.s32.totalorder %s992_s2, 0 }
 0x385   :  { %996 = shalt.err (%p2460_p9)  }
 0x386   :  { %998 = vsyncmov [#allocation3 + $0x4d] }
 0x389   :  { %s999_s0 = vpop.sfrf %998 }
 0x38a   :  { %p2461_p10 = scmp.ne.s32.totalorder %s999_s0, 0 }
 0x38c   :  { %1003 = shalt.err (%p2461_p10)  }
 0x38d   :  { %1005 = vsyncmov [#allocation3 + $0x4e] }
 0x390   :  { %s1006_s24 = vpop.sfrf %1005 }
 0x391   :  { %p2462_p11 = scmp.ne.s32.totalorder %s1006_s24, 0 }
 0x393   :  { %1010 = shalt.err (%p2462_p11)  }
 0x394   :  { %1012 = vsyncmov [#allocation3 + $0x4f] }
 0x397   :  { %s1013_s20 = vpop.sfrf %1012 }
 0x398   :  { %p2463_p12 = scmp.ne.s32.totalorder %s1013_s20, 0 }
 0x39a   :  { %1017 = shalt.err (%p2463_p12)  }
 0x39b   :  { %1019 = vsyncmov [#allocation3 + $0x50] }
 0x39e   :  { %s1020_s6 = vpop.sfrf %1019 }
 0x39f   :  { %p2464_p13 = scmp.ne.s32.totalorder %s1020_s6, 0 }
 0x3a1   :  { %1024 = shalt.err (%p2464_p13)  }
 0x3a2   :  { %1026 = vsyncmov [#allocation3 + $0x51] }
 0x3a5   :  { %s1027_s12 = vpop.sfrf %1026 }
 0x3a6   :  { %p2465_p0 = scmp.ne.s32.totalorder %s1027_s12, 0 }
 0x3a8   :  { %1031 = shalt.err (%p2465_p0)  }
 0x3a9   :  { %1033 = vsyncmov [#allocation3 + $0x52] }
 0x3ac   :  { %s1034_s13 = vpop.sfrf %1033 }
 0x3ad   :  { %p2466_p1 = scmp.ne.s32.totalorder %s1034_s13, 0 }
 0x3af   :  { %1038 = shalt.err (%p2466_p1)  }
 0x3b0   :  { %1040 = vsyncmov [#allocation3 + $0x53] }
 0x3b3   :  { %s1041_s14 = vpop.sfrf %1040 }
 0x3b4   :  { %p2467_p2 = scmp.ne.s32.totalorder %s1041_s14, 0 }
 0x3b6   :  { %1045 = shalt.err (%p2467_p2)  }
 0x3b7   :  { %1047 = vsyncmov [#allocation3 + $0x54] }
 0x3ba   :  { %s1048_s15 = vpop.sfrf %1047 }
 0x3bb   :  { %p2468_p5 = scmp.ne.s32.totalorder %s1048_s15, 0 }
 0x3bd   :  { %1052 = shalt.err (%p2468_p5)  }
 0x3be   :  { %1054 = vsyncmov [#allocation3 + $0x55] }
 0x3c1   :  { %s1055_s22 = vpop.sfrf %1054 }
 0x3c2   :  { %p2469_p6 = scmp.ne.s32.totalorder %s1055_s22, 0 }
 0x3c4   :  { %1059 = shalt.err (%p2469_p6)  }
 0x3c5   :  { %1061 = vsyncmov [#allocation3 + $0x56] }
 0x3c8   :  { %s1062_s8 = vpop.sfrf %1061 }
 0x3c9   :  { %p2470_p3 = scmp.ne.s32.totalorder %s1062_s8, 0 }
 0x3cb   :  { %1066 = shalt.err (%p2470_p3)  }
 0x3cc   :  { %1068 = vsyncmov [#allocation3 + $0x57] }
 0x3cf   :  { %s1069_s28 = vpop.sfrf %1068 }
 0x3d0   :  { %p2471_p4 = scmp.ne.s32.totalorder %s1069_s28, 0 }
 0x3d2   :  { %1073 = shalt.err (%p2471_p4)  }
 0x3d3   :  { %1075 = vsyncmov [#allocation3 + $0x58] }
 0x3d6   :  { %s1076_s9 = vpop.sfrf %1075 }
 0x3d7   :  { %p2472_p7 = scmp.ne.s32.totalorder %s1076_s9, 0 }
 0x3d9   :  { %1080 = shalt.err (%p2472_p7)  }
 0x3da   :  { %1082 = vsyncmov [#allocation3 + $0x59] }
 0x3dd   :  { %s1083_s11 = vpop.sfrf %1082 }
 0x3de   :  { %p2473_p8 = scmp.ne.s32.totalorder %s1083_s11, 0 }
 0x3e0   :  { %1087 = shalt.err (%p2473_p8)  }
 0x3e1   :  { %1089 = vsyncmov [#allocation3 + $0x5a] }
 0x3e4   :  { %s1090_s10 = vpop.sfrf %1089 }
 0x3e5   :  { %p2474_p9 = scmp.ne.s32.totalorder %s1090_s10, 0 }
 0x3e7   :  { %1094 = shalt.err (%p2474_p9)  }
 0x3e8   :  { %1096 = vsyncmov [#allocation3 + $0x5b] }
 0x3eb   :  { %s1097_s27 = vpop.sfrf %1096 }
 0x3ec   :  { %p2475_p10 = scmp.ne.s32.totalorder %s1097_s27, 0 }
 0x3ee   :  { %1101 = shalt.err (%p2475_p10)  }
 0x3ef   :  { %1103 = vsyncmov [#allocation3 + $0x5c] }
 0x3f2   :  { %s1104_s23 = vpop.sfrf %1103 }
 0x3f3   :  { %p2476_p11 = scmp.ne.s32.totalorder %s1104_s23, 0 }
 0x3f5   :  { %1108 = shalt.err (%p2476_p11)  }
 0x3f6   :  { %1110 = vsyncmov [#allocation3 + $0x5d] }
 0x3f9   :  { %s1111_s19 = vpop.sfrf %1110 }
 0x3fa   :  { %p2477_p12 = scmp.ne.s32.totalorder %s1111_s19, 0 }
 0x3fc   :  { %1115 = shalt.err (%p2477_p12)  }
 0x3fd   :  { %1117 = vsyncmov [#allocation3 + $0x5e] }
 0x400   :  { %s1118_s25 = vpop.sfrf %1117 }
 0x401   :  { %p2478_p13 = scmp.ne.s32.totalorder %s1118_s25, 0 }
 0x403   :  { %1122 = shalt.err (%p2478_p13)  }
 0x404   :  { %1124 = vsyncmov [#allocation3 + $0x5f] }
 0x407   :  { %s1125_s26 = vpop.sfrf %1124 }
 0x408   :  { %p2479_p0 = scmp.ne.s32.totalorder %s1125_s26, 0 }
 0x40a   :  { %1129 = shalt.err (%p2479_p0)  }
 0x40b   :  { %1131 = vsyncmov [#allocation3 + $0x60] }
 0x40e   :  { %s1132_s30 = vpop.sfrf %1131 }
 0x40f   :  { %p2480_p1 = scmp.ne.s32.totalorder %s1132_s30, 0 }
 0x411   :  { %1136 = shalt.err (%p2480_p1)  }
 0x412   :  { %1138 = vsyncmov [#allocation3 + $0x61] }
 0x415   :  { %s1139_s1 = vpop.sfrf %1138 }
 0x416   :  { %p2481_p2 = scmp.ne.s32.totalorder %s1139_s1, 0 }
 0x418   :  { %1143 = shalt.err (%p2481_p2)  }
 0x419   :  { %1145 = vsyncmov [#allocation3 + $0x62] }
 0x41c   :  { %s1146_s3 = vpop.sfrf %1145 }
 0x41d   :  { %p2482_p5 = scmp.ne.s32.totalorder %s1146_s3, 0 }
 0x41f   :  { %1150 = shalt.err (%p2482_p5)  }
 0x420   :  { %1152 = vsyncmov [#allocation3 + $0x63] }
 0x423   :  { %s1153_s16 = vpop.sfrf %1152 }
 0x424   :  { %p2483_p6 = scmp.ne.s32.totalorder %s1153_s16, 0 }
 0x426   :  { %1157 = shalt.err (%p2483_p6)  }
 0x427   :  { %1159 = vsyncmov [#allocation3 + $0x64] }
 0x42a   :  { %s1160_s17 = vpop.sfrf %1159 }
 0x42b   :  { %p2484_p3 = scmp.ne.s32.totalorder %s1160_s17, 0 }
 0x42d   :  { %1164 = shalt.err (%p2484_p3)  }
 0x42e   :  { %1166 = vsyncmov [#allocation3 + $0x65] }
 0x431   :  { %s1167_s18 = vpop.sfrf %1166 }
 0x432   :  { %p2485_p4 = scmp.ne.s32.totalorder %s1167_s18, 0 }
 0x434   :  { %1171 = shalt.err (%p2485_p4)  }
 0x435   :  { %1173 = vsyncmov [#allocation3 + $0x66] }
 0x438   :  { %s1174_s21 = vpop.sfrf %1173 }
 0x439   :  { %p2486_p7 = scmp.ne.s32.totalorder %s1174_s21, 0 }
 0x43b   :  { %1178 = shalt.err (%p2486_p7)  }
 0x43c   :  { %1180 = vsyncmov [#allocation3 + $0x67] }
 0x43f   :  { %s1181_s29 = vpop.sfrf %1180 }
 0x440   :  { %p2487_p8 = scmp.ne.s32.totalorder %s1181_s29, 0 }
 0x442   :  { %1185 = shalt.err (%p2487_p8)  }
 0x443   :  { %1187 = vsyncmov [#allocation3 + $0x68] }
 0x446   :  { %s1188_s7 = vpop.sfrf %1187 }
 0x447   :  { %p2488_p9 = scmp.ne.s32.totalorder %s1188_s7, 0 }
 0x449   :  { %1192 = shalt.err (%p2488_p9)  }
 0x44a   :  { %1194 = vsyncmov [#allocation3 + $0x69] }
 0x44d   :  { %s1195_s4 = vpop.sfrf %1194 }
 0x44e   :  { %p2489_p10 = scmp.ne.s32.totalorder %s1195_s4, 0 }
 0x450   :  { %1199 = shalt.err (%p2489_p10)  }
 0x451   :  { %1201 = vsyncmov [#allocation3 + $0x6a] }
 0x454   :  { %s1202_s5 = vpop.sfrf %1201 }
 0x455   :  { %p2490_p11 = scmp.ne.s32.totalorder %s1202_s5, 0 }
 0x457   :  { %1206 = shalt.err (%p2490_p11)  }
 0x458   :  { %1208 = vsyncmov [#allocation3 + $0x6b] }
 0x45b   :  { %s1209_s2 = vpop.sfrf %1208 }
 0x45c   :  { %p2491_p12 = scmp.ne.s32.totalorder %s1209_s2, 0 }
 0x45e   :  { %1213 = shalt.err (%p2491_p12)  }
 0x45f   :  { %1215 = vsyncmov [#allocation3 + $0x6c] }
 0x462   :  { %s1216_s0 = vpop.sfrf %1215 }
 0x463   :  { %p2492_p13 = scmp.ne.s32.totalorder %s1216_s0, 0 }
 0x465   :  { %1220 = shalt.err (%p2492_p13)  }
 0x466   :  { %1222 = vsyncmov [#allocation3 + $0x6d] }
 0x469   :  { %s1223_s24 = vpop.sfrf %1222 }
 0x46a   :  { %p2493_p0 = scmp.ne.s32.totalorder %s1223_s24, 0 }
 0x46c   :  { %1227 = shalt.err (%p2493_p0)  }
 0x46d   :  { %1229 = vsyncmov [#allocation3 + $0x6e] }
 0x470   :  { %s1230_s20 = vpop.sfrf %1229 }
 0x471   :  { %p2494_p1 = scmp.ne.s32.totalorder %s1230_s20, 0 }
 0x473   :  { %1234 = shalt.err (%p2494_p1)  }
 0x474   :  { %1236 = vsyncmov [#allocation3 + $0x6f] }
 0x477   :  { %s1237_s6 = vpop.sfrf %1236 }
 0x478   :  { %p2495_p2 = scmp.ne.s32.totalorder %s1237_s6, 0 }
 0x47a   :  { %1241 = shalt.err (%p2495_p2)  }
 0x47b   :  { %1243 = vsyncmov [#allocation3 + $0x70] }
 0x47e   :  { %s1244_s12 = vpop.sfrf %1243 }
 0x47f   :  { %p2496_p5 = scmp.ne.s32.totalorder %s1244_s12, 0 }
 0x481   :  { %1248 = shalt.err (%p2496_p5)  }
 0x482   :  { %1250 = vsyncmov [#allocation3 + $0x71] }
 0x485   :  { %s1251_s13 = vpop.sfrf %1250 }
 0x486   :  { %p2497_p6 = scmp.ne.s32.totalorder %s1251_s13, 0 }
 0x488   :  { %1255 = shalt.err (%p2497_p6)  }
 0x489   :  { %1257 = vsyncmov [#allocation3 + $0x72] }
 0x48c   :  { %s1258_s14 = vpop.sfrf %1257 }
 0x48d   :  { %p2498_p3 = scmp.ne.s32.totalorder %s1258_s14, 0 }
 0x48f   :  { %1262 = shalt.err (%p2498_p3)  }
 0x490   :  { %1264 = vsyncmov [#allocation3 + $0x73] }
 0x493   :  { %s1265_s15 = vpop.sfrf %1264 }
 0x494   :  { %p2499_p4 = scmp.ne.s32.totalorder %s1265_s15, 0 }
 0x496   :  { %1269 = shalt.err (%p2499_p4)  }
 0x497   :  { %1271 = vsyncmov [#allocation3 + $0x74] }
 0x49a   :  { %s1272_s22 = vpop.sfrf %1271 }
 0x49b   :  { %p2500_p7 = scmp.ne.s32.totalorder %s1272_s22, 0 }
 0x49d   :  { %1276 = shalt.err (%p2500_p7)  }
 0x49e   :  { %1278 = vsyncmov [#allocation3 + $0x75] }
 0x4a1   :  { %s1279_s8 = vpop.sfrf %1278 }
 0x4a2   :  { %p2501_p8 = scmp.ne.s32.totalorder %s1279_s8, 0 }
 0x4a4   :  { %1283 = shalt.err (%p2501_p8)  }
 0x4a5   :  { %1285 = vsyncmov [#allocation3 + $0x76] }
 0x4a8   :  { %s1286_s28 = vpop.sfrf %1285 }
 0x4a9   :  { %p2502_p9 = scmp.ne.s32.totalorder %s1286_s28, 0 }
 0x4ab   :  { %1290 = shalt.err (%p2502_p9)  }
 0x4ac   :  { %1292 = vsyncmov [#allocation3 + $0x77] }
 0x4af   :  { %s1293_s9 = vpop.sfrf %1292 }
 0x4b0   :  { %p2503_p10 = scmp.ne.s32.totalorder %s1293_s9, 0 }
 0x4b2   :  { %1297 = shalt.err (%p2503_p10)  }
 0x4b3   :  { %1299 = vsyncmov [#allocation3 + $0x78] }
 0x4b6   :  { %s1300_s11 = vpop.sfrf %1299 }
 0x4b7   :  { %p2504_p11 = scmp.ne.s32.totalorder %s1300_s11, 0 }
 0x4b9   :  { %1304 = shalt.err (%p2504_p11)  }
 0x4ba   :  { %1306 = vsyncmov [#allocation3 + $0x79] }
 0x4bd   :  { %s1307_s10 = vpop.sfrf %1306 }
 0x4be   :  { %p2505_p12 = scmp.ne.s32.totalorder %s1307_s10, 0 }
 0x4c0   :  { %1311 = shalt.err (%p2505_p12)  }
 0x4c1   :  { %1313 = vsyncmov [#allocation3 + $0x7a] }
 0x4c4   :  { %s1314_s27 = vpop.sfrf %1313 }
 0x4c5   :  { %p2506_p13 = scmp.ne.s32.totalorder %s1314_s27, 0 }
 0x4c7   :  { %1318 = shalt.err (%p2506_p13)  }
 0x4c8   :  { %1320 = vsyncmov [#allocation3 + $0x7b] }
 0x4cb   :  { %s1321_s23 = vpop.sfrf %1320 }
 0x4cc   :  { %p2507_p0 = scmp.ne.s32.totalorder %s1321_s23, 0 }
 0x4ce   :  { %1325 = shalt.err (%p2507_p0)  }
 0x4cf   :  { %1327 = vsyncmov [#allocation3 + $0x7c] }
 0x4d2   :  { %s1328_s19 = vpop.sfrf %1327 }
 0x4d3   :  { %p2508_p1 = scmp.ne.s32.totalorder %s1328_s19, 0 }
 0x4d5   :  { %1332 = shalt.err (%p2508_p1)  }
 0x4d6   :  { %1334 = vsyncmov [#allocation3 + $0x7d] }
 0x4d9   :  { %s1335_s25 = vpop.sfrf %1334 }
 0x4da   :  { %p2509_p2 = scmp.ne.s32.totalorder %s1335_s25, 0 }
 0x4dc   :  { %1339 = shalt.err (%p2509_p2)  }
 0x4dd   :  { %1341 = vsyncmov [#allocation3 + $0x7e] }
 0x4e0   :  { %s1342_s26 = vpop.sfrf %1341 }
 0x4e1   :  { %p2510_p5 = scmp.ne.s32.totalorder %s1342_s26, 0 }
 0x4e3   :  { %1346 = shalt.err (%p2510_p5)  }
 0x4e4   :  { %1348 = vsyncmov [#allocation3 + $0x7f] }
 0x4e7   :  { %s1349_s30 = vpop.sfrf %1348 }
 0x4e8   :  { %p2511_p6 = scmp.ne.s32.totalorder %s1349_s30, 0 }
 0x4ea   :  { %1353 = shalt.err (%p2511_p6)  }
 0x4eb   :  { %1355 = vsyncmov [#allocation3 + $0x80] }
 0x4ee   :  { %s1356_s1 = vpop.sfrf %1355 }
 0x4ef   :  { %p2512_p3 = scmp.ne.s32.totalorder %s1356_s1, 0 }
 0x4f1   :  { %1360 = shalt.err (%p2512_p3)  }
 0x4f2   :  { %1362 = vsyncmov [#allocation3 + $0x81] }
 0x4f5   :  { %s1363_s3 = vpop.sfrf %1362 }
 0x4f6   :  { %p2513_p4 = scmp.ne.s32.totalorder %s1363_s3, 0 }
 0x4f8   :  { %1367 = shalt.err (%p2513_p4)  }
 0x4f9   :  { %1369 = vsyncmov [#allocation3 + $0x82] }
 0x4fc   :  { %s1370_s16 = vpop.sfrf %1369 }
 0x4fd   :  { %p2514_p7 = scmp.ne.s32.totalorder %s1370_s16, 0 }
 0x4ff   :  { %1374 = shalt.err (%p2514_p7)  }
 0x500   :  { %1376 = vsyncmov [#allocation3 + $0x83] }
 0x503   :  { %s1377_s17 = vpop.sfrf %1376 }
 0x504   :  { %p2515_p8 = scmp.ne.s32.totalorder %s1377_s17, 0 }
 0x506   :  { %1381 = shalt.err (%p2515_p8)  }
 0x507   :  { %1383 = vsyncmov [#allocation3 + $0x84] }
 0x50a   :  { %s1384_s18 = vpop.sfrf %1383 }
 0x50b   :  { %p2516_p9 = scmp.ne.s32.totalorder %s1384_s18, 0 }
 0x50d   :  { %1388 = shalt.err (%p2516_p9)  }
 0x50e   :  { %1390 = vsyncmov [#allocation3 + $0x85] }
 0x511   :  { %s1391_s21 = vpop.sfrf %1390 }
 0x512   :  { %p2517_p10 = scmp.ne.s32.totalorder %s1391_s21, 0 }
 0x514   :  { %1395 = shalt.err (%p2517_p10)  }
 0x515   :  { %1397 = vsyncmov [#allocation3 + $0x86] }
 0x518   :  { %s1398_s29 = vpop.sfrf %1397 }
 0x519   :  { %p2518_p11 = scmp.ne.s32.totalorder %s1398_s29, 0 }
 0x51b   :  { %1402 = shalt.err (%p2518_p11)  }
 0x51c   :  { %1404 = vsyncmov [#allocation3 + $0x87] }
 0x51f   :  { %s1405_s7 = vpop.sfrf %1404 }
 0x520   :  { %p2519_p12 = scmp.ne.s32.totalorder %s1405_s7, 0 }
 0x522   :  { %1409 = shalt.err (%p2519_p12)  }
 0x523   :  { %1411 = vsyncmov [#allocation3 + $0x88] }
 0x526   :  { %s1412_s4 = vpop.sfrf %1411 }
 0x527   :  { %p2520_p13 = scmp.ne.s32.totalorder %s1412_s4, 0 }
 0x529   :  { %1416 = shalt.err (%p2520_p13)  }
 0x52a   :  { %1418 = vsyncmov [#allocation3 + $0x89] }
 0x52d   :  { %s1419_s5 = vpop.sfrf %1418 }
 0x52e   :  { %p2521_p0 = scmp.ne.s32.totalorder %s1419_s5, 0 }
 0x530   :  { %1423 = shalt.err (%p2521_p0)  }
 0x531   :  { %1425 = vsyncmov [#allocation3 + $0x8a] }
 0x534   :  { %s1426_s2 = vpop.sfrf %1425 }
 0x535   :  { %p2522_p1 = scmp.ne.s32.totalorder %s1426_s2, 0 }
 0x537   :  { %1430 = shalt.err (%p2522_p1)  }
 0x538   :  { %1432 = vsyncmov [#allocation3 + $0x8b] }
 0x53b   :  { %s1433_s0 = vpop.sfrf %1432 }
 0x53c   :  { %p2523_p2 = scmp.ne.s32.totalorder %s1433_s0, 0 }
 0x53e   :  { %1437 = shalt.err (%p2523_p2)  }
 0x53f   :  { %1439 = vsyncmov [#allocation3 + $0x8c] }
 0x542   :  { %s1440_s24 = vpop.sfrf %1439 }
 0x543   :  { %p2524_p5 = scmp.ne.s32.totalorder %s1440_s24, 0 }
 0x545   :  { %1444 = shalt.err (%p2524_p5)  }
 0x546   :  { %1446 = vsyncmov [#allocation3 + $0x8d] }
 0x549   :  { %s1447_s20 = vpop.sfrf %1446 }
 0x54a   :  { %p2525_p6 = scmp.ne.s32.totalorder %s1447_s20, 0 }
 0x54c   :  { %1451 = shalt.err (%p2525_p6)  }
 0x54d   :  { %1453 = vsyncmov [#allocation3 + $0x8e] }
 0x550   :  { %s1454_s6 = vpop.sfrf %1453 }
 0x551   :  { %p2526_p3 = scmp.ne.s32.totalorder %s1454_s6, 0 }
 0x553   :  { %1458 = shalt.err (%p2526_p3)  }
 0x554   :  { %1460 = vsyncmov [#allocation3 + $0x8f] }
 0x557   :  { %s1461_s12 = vpop.sfrf %1460 }
 0x558   :  { %p2527_p4 = scmp.ne.s32.totalorder %s1461_s12, 0 }
 0x55a   :  { %1465 = shalt.err (%p2527_p4)  }
 0x55b   :  { %1467 = vsyncmov [#allocation3 + $0x90] }
 0x55e   :  { %s1468_s13 = vpop.sfrf %1467 }
 0x55f   :  { %p2528_p7 = scmp.ne.s32.totalorder %s1468_s13, 0 }
 0x561   :  { %1472 = shalt.err (%p2528_p7)  }
 0x562   :  { %1474 = vsyncmov [#allocation3 + $0x91] }
 0x565   :  { %s1475_s14 = vpop.sfrf %1474 }
 0x566   :  { %p2529_p8 = scmp.ne.s32.totalorder %s1475_s14, 0 }
 0x568   :  { %1479 = shalt.err (%p2529_p8)  }
 0x569   :  { %1481 = vsyncmov [#allocation3 + $0x92] }
 0x56c   :  { %s1482_s15 = vpop.sfrf %1481 }
 0x56d   :  { %p2530_p9 = scmp.ne.s32.totalorder %s1482_s15, 0 }
 0x56f   :  { %1486 = shalt.err (%p2530_p9)  }
 0x570   :  { %1488 = vsyncmov [#allocation3 + $0x93] }
 0x573   :  { %s1489_s22 = vpop.sfrf %1488 }
 0x574   :  { %p2531_p10 = scmp.ne.s32.totalorder %s1489_s22, 0 }
 0x576   :  { %1493 = shalt.err (%p2531_p10)  }
 0x577   :  { %1495 = vsyncmov [#allocation3 + $0x94] }
 0x57a   :  { %s1496_s8 = vpop.sfrf %1495 }
 0x57b   :  { %p2532_p11 = scmp.ne.s32.totalorder %s1496_s8, 0 }
 0x57d   :  { %1500 = shalt.err (%p2532_p11)  }
 0x57e   :  { %1502 = vsyncmov [#allocation3 + $0x95] }
 0x581   :  { %s1503_s28 = vpop.sfrf %1502 }
 0x582   :  { %p2533_p12 = scmp.ne.s32.totalorder %s1503_s28, 0 }
 0x584   :  { %1507 = shalt.err (%p2533_p12)  }
 0x585   :  { %1509 = vsyncmov [#allocation3 + $0x96] }
 0x588   :  { %s1510_s9 = vpop.sfrf %1509 }
 0x589   :  { %p2534_p13 = scmp.ne.s32.totalorder %s1510_s9, 0 }
 0x58b   :  { %1514 = shalt.err (%p2534_p13)  }
 0x58c   :  { %1516 = vsyncmov [#allocation3 + $0x97] }
 0x58f   :  { %s1517_s11 = vpop.sfrf %1516 }
 0x590   :  { %p2535_p0 = scmp.ne.s32.totalorder %s1517_s11, 0 }
 0x592   :  { %1521 = shalt.err (%p2535_p0)  }
 0x593   :  { %1523 = vsyncmov [#allocation3 + $0x98] }
 0x596   :  { %s1524_s10 = vpop.sfrf %1523 }
 0x597   :  { %p2536_p1 = scmp.ne.s32.totalorder %s1524_s10, 0 }
 0x599   :  { %1528 = shalt.err (%p2536_p1)  }
 0x59a   :  { %1530 = vsyncmov [#allocation3 + $0x99] }
 0x59d   :  { %s1531_s27 = vpop.sfrf %1530 }
 0x59e   :  { %p2537_p2 = scmp.ne.s32.totalorder %s1531_s27, 0 }
 0x5a0   :  { %1535 = shalt.err (%p2537_p2)  }
 0x5a1   :  { %1537 = vsyncmov [#allocation3 + $0x9a] }
 0x5a4   :  { %s1538_s23 = vpop.sfrf %1537 }
 0x5a5   :  { %p2538_p5 = scmp.ne.s32.totalorder %s1538_s23, 0 }
 0x5a7   :  { %1542 = shalt.err (%p2538_p5)  }
 0x5a8   :  { %1544 = vsyncmov [#allocation3 + $0x9b] }
 0x5ab   :  { %s1545_s19 = vpop.sfrf %1544 }
 0x5ac   :  { %p2539_p6 = scmp.ne.s32.totalorder %s1545_s19, 0 }
 0x5ae   :  { %1549 = shalt.err (%p2539_p6)  }
 0x5af   :  { %1551 = vsyncmov [#allocation3 + $0x9c] }
 0x5b2   :  { %s1552_s25 = vpop.sfrf %1551 }
 0x5b3   :  { %p2540_p3 = scmp.ne.s32.totalorder %s1552_s25, 0 }
 0x5b5   :  { %1556 = shalt.err (%p2540_p3)  }
 0x5b6   :  { %1558 = vsyncmov [#allocation3 + $0x9d] }
 0x5b9   :  { %s1559_s26 = vpop.sfrf %1558 }
 0x5ba   :  { %p2541_p4 = scmp.ne.s32.totalorder %s1559_s26, 0 }
 0x5bc   :  { %1563 = shalt.err (%p2541_p4)  }
 0x5bd   :  { %1565 = vsyncmov [#allocation3 + $0x9e] }
 0x5c0   :  { %s1566_s30 = vpop.sfrf %1565 }
 0x5c1   :  { %p2542_p7 = scmp.ne.s32.totalorder %s1566_s30, 0 }
 0x5c3   :  { %1570 = shalt.err (%p2542_p7)  }
 0x5c4   :  { %1572 = vsyncmov [#allocation3 + $0x9f] }
 0x5c7   :  { %s1573_s1 = vpop.sfrf %1572 }
 0x5c8   :  { %p2543_p8 = scmp.ne.s32.totalorder %s1573_s1, 0 }
 0x5ca   :  { %1577 = shalt.err (%p2543_p8)  }
 0x5cb   :  { %1579 = vsyncmov [#allocation3 + $0xa0] }
 0x5ce   :  { %s1580_s3 = vpop.sfrf %1579 }
 0x5cf   :  { %p2544_p9 = scmp.ne.s32.totalorder %s1580_s3, 0 }
 0x5d1   :  { %1584 = shalt.err (%p2544_p9)  }
 0x5d2   :  { %1586 = vsyncmov [#allocation3 + $0xa1] }
 0x5d5   :  { %s1587_s16 = vpop.sfrf %1586 }
 0x5d6   :  { %p2545_p10 = scmp.ne.s32.totalorder %s1587_s16, 0 }
 0x5d8   :  { %1591 = shalt.err (%p2545_p10)  }
 0x5d9   :  { %1593 = vsyncmov [#allocation3 + $0xa2] }
 0x5dc   :  { %s1594_s17 = vpop.sfrf %1593 }
 0x5dd   :  { %p2546_p11 = scmp.ne.s32.totalorder %s1594_s17, 0 }
 0x5df   :  { %1598 = shalt.err (%p2546_p11)  }
 0x5e0   :  { %1600 = vsyncmov [#allocation3 + $0xa3] }
 0x5e3   :  { %s1601_s18 = vpop.sfrf %1600 }
 0x5e4   :  { %p2547_p12 = scmp.ne.s32.totalorder %s1601_s18, 0 }
 0x5e6   :  { %1605 = shalt.err (%p2547_p12)  }
 0x5e7   :  { %1607 = vsyncmov [#allocation3 + $0xa4] }
 0x5ea   :  { %s1608_s21 = vpop.sfrf %1607 }
 0x5eb   :  { %p2548_p13 = scmp.ne.s32.totalorder %s1608_s21, 0 }
 0x5ed   :  { %1612 = shalt.err (%p2548_p13)  }
 0x5ee   :  { %1614 = vsyncmov [#allocation3 + $0xa5] }
 0x5f1   :  { %s1615_s29 = vpop.sfrf %1614 }
 0x5f2   :  { %p2549_p0 = scmp.ne.s32.totalorder %s1615_s29, 0 }
 0x5f4   :  { %1619 = shalt.err (%p2549_p0)  }
 0x5f5   :  { %1621 = vsyncmov [#allocation3 + $0xa6] }
 0x5f8   :  { %s1622_s7 = vpop.sfrf %1621 }
 0x5f9   :  { %p2550_p1 = scmp.ne.s32.totalorder %s1622_s7, 0 }
 0x5fb   :  { %1626 = shalt.err (%p2550_p1)  }
 0x5fc   :  { %1628 = vsyncmov [#allocation3 + $0xa7] }
 0x5ff   :  { %s1629_s4 = vpop.sfrf %1628 }
 0x600   :  { %p2551_p2 = scmp.ne.s32.totalorder %s1629_s4, 0 }
 0x602   :  { %1633 = shalt.err (%p2551_p2)  }
 0x603   :  { %1635 = vsyncmov [#allocation3 + $0xa8] }
 0x606   :  { %s1636_s5 = vpop.sfrf %1635 }
 0x607   :  { %p2552_p5 = scmp.ne.s32.totalorder %s1636_s5, 0 }
 0x609   :  { %1640 = shalt.err (%p2552_p5)  }
 0x60a   :  { %1642 = vsyncmov [#allocation3 + $0xa9] }
 0x60d   :  { %s1643_s2 = vpop.sfrf %1642 }
 0x60e   :  { %p2553_p6 = scmp.ne.s32.totalorder %s1643_s2, 0 }
 0x610   :  { %1647 = shalt.err (%p2553_p6)  }
 0x611   :  { %1649 = vsyncmov [#allocation3 + $0xaa] }
 0x614   :  { %s1650_s0 = vpop.sfrf %1649 }
 0x615   :  { %p2554_p3 = scmp.ne.s32.totalorder %s1650_s0, 0 }
 0x617   :  { %1654 = shalt.err (%p2554_p3)  }
 0x618   :  { %1656 = vsyncmov [#allocation3 + $0xab] }
 0x61b   :  { %s1657_s24 = vpop.sfrf %1656 }
 0x61c   :  { %p2555_p4 = scmp.ne.s32.totalorder %s1657_s24, 0 }
 0x61e   :  { %1661 = shalt.err (%p2555_p4)  }
 0x61f   :  { %1663 = vsyncmov [#allocation3 + $0xac] }
 0x622   :  { %s1664_s20 = vpop.sfrf %1663 }
 0x623   :  { %p2556_p7 = scmp.ne.s32.totalorder %s1664_s20, 0 }
 0x625   :  { %1668 = shalt.err (%p2556_p7)  }
 0x626   :  { %1670 = vsyncmov [#allocation3 + $0xad] }
 0x629   :  { %s1671_s6 = vpop.sfrf %1670 }
 0x62a   :  { %p2557_p8 = scmp.ne.s32.totalorder %s1671_s6, 0 }
 0x62c   :  { %1675 = shalt.err (%p2557_p8)  }
 0x62d   :  { %1677 = vsyncmov [#allocation3 + $0xae] }
 0x630   :  { %s1678_s12 = vpop.sfrf %1677 }
 0x631   :  { %p2558_p9 = scmp.ne.s32.totalorder %s1678_s12, 0 }
 0x633   :  { %1682 = shalt.err (%p2558_p9)  }
 0x634   :  { %1684 = vsyncmov [#allocation3 + $0xaf] }
 0x637   :  { %s1685_s13 = vpop.sfrf %1684 }
 0x638   :  { %p2559_p10 = scmp.ne.s32.totalorder %s1685_s13, 0 }
 0x63a   :  { %1689 = shalt.err (%p2559_p10)  }
 0x63b   :  { %1691 = vsyncmov [#allocation3 + $0xb0] }
 0x63e   :  { %s1692_s14 = vpop.sfrf %1691 }
 0x63f   :  { %p2560_p11 = scmp.ne.s32.totalorder %s1692_s14, 0 }
 0x641   :  { %1696 = shalt.err (%p2560_p11)  }
 0x642   :  { %1698 = vsyncmov [#allocation3 + $0xb1] }
 0x645   :  { %s1699_s15 = vpop.sfrf %1698 }
 0x646   :  { %p2561_p12 = scmp.ne.s32.totalorder %s1699_s15, 0 }
 0x648   :  { %1703 = shalt.err (%p2561_p12)  }
 0x649   :  { %1705 = vsyncmov [#allocation3 + $0xb2] }
 0x64c   :  { %s1706_s22 = vpop.sfrf %1705 }
 0x64d   :  { %p2562_p13 = scmp.ne.s32.totalorder %s1706_s22, 0 }
 0x64f   :  { %1710 = shalt.err (%p2562_p13)  }
 0x650   :  { %1712 = vsyncmov [#allocation3 + $0xb3] }
 0x653   :  { %s1713_s8 = vpop.sfrf %1712 }
 0x654   :  { %p2563_p0 = scmp.ne.s32.totalorder %s1713_s8, 0 }
 0x656   :  { %1717 = shalt.err (%p2563_p0)  }
 0x657   :  { %1719 = vsyncmov [#allocation3 + $0xb4] }
 0x65a   :  { %s1720_s28 = vpop.sfrf %1719 }
 0x65b   :  { %p2564_p1 = scmp.ne.s32.totalorder %s1720_s28, 0 }
 0x65d   :  { %1724 = shalt.err (%p2564_p1)  }
 0x65e   :  { %1726 = vsyncmov [#allocation3 + $0xb5] }
 0x661   :  { %s1727_s9 = vpop.sfrf %1726 }
 0x662   :  { %p2565_p2 = scmp.ne.s32.totalorder %s1727_s9, 0 }
 0x664   :  { %1731 = shalt.err (%p2565_p2)  }
 0x665   :  { %1733 = vsyncmov [#allocation3 + $0xb6] }
 0x668   :  { %s1734_s11 = vpop.sfrf %1733 }
 0x669   :  { %p2566_p5 = scmp.ne.s32.totalorder %s1734_s11, 0 }
 0x66b   :  { %1738 = shalt.err (%p2566_p5)  }
 0x66c   :  { %1740 = vsyncmov [#allocation3 + $0xb7] }
 0x66f   :  { %s1741_s10 = vpop.sfrf %1740 }
 0x670   :  { %p2567_p6 = scmp.ne.s32.totalorder %s1741_s10, 0 }
 0x672   :  { %1745 = shalt.err (%p2567_p6)  }
 0x673   :  { %1747 = vsyncmov [#allocation3 + $0xb8] }
 0x676   :  { %s1748_s27 = vpop.sfrf %1747 }
 0x677   :  { %p2568_p3 = scmp.ne.s32.totalorder %s1748_s27, 0 }
 0x679   :  { %1752 = shalt.err (%p2568_p3)  }
 0x67a   :  { %1754 = vsyncmov [#allocation3 + $0xb9] }
 0x67d   :  { %s1755_s23 = vpop.sfrf %1754 }
 0x67e   :  { %p2569_p4 = scmp.ne.s32.totalorder %s1755_s23, 0 }
 0x680   :  { %1759 = shalt.err (%p2569_p4)  }
 0x681   :  { %1761 = vsyncmov [#allocation3 + $0xba] }
 0x684   :  { %s1762_s19 = vpop.sfrf %1761 }
 0x685   :  { %p2570_p7 = scmp.ne.s32.totalorder %s1762_s19, 0 }
 0x687   :  { %1766 = shalt.err (%p2570_p7)  }
 0x688   :  { %1768 = vsyncmov [#allocation3 + $0xbb] }
 0x68b   :  { %s1769_s25 = vpop.sfrf %1768 }
 0x68c   :  { %p2571_p8 = scmp.ne.s32.totalorder %s1769_s25, 0 }
 0x68e   :  { %1773 = shalt.err (%p2571_p8)  }
 0x68f   :  { %1775 = vsyncmov [#allocation3 + $0xbc] }
 0x692   :  { %s1776_s26 = vpop.sfrf %1775 }
 0x693   :  { %p2572_p9 = scmp.ne.s32.totalorder %s1776_s26, 0 }
 0x695   :  { %1780 = shalt.err (%p2572_p9)  }
 0x696   :  { %1782 = vsyncmov [#allocation3 + $0xbd] }
 0x699   :  { %s1783_s30 = vpop.sfrf %1782 }
 0x69a   :  { %p2573_p10 = scmp.ne.s32.totalorder %s1783_s30, 0 }
 0x69c   :  { %1787 = shalt.err (%p2573_p10)  }
 0x69d   :  { %1789 = vsyncmov [#allocation3 + $0xbe] }
 0x6a0   :  { %s1790_s1 = vpop.sfrf %1789 }
 0x6a1   :  { %p2574_p11 = scmp.ne.s32.totalorder %s1790_s1, 0 }
 0x6a3   :  { %1794 = shalt.err (%p2574_p11)  }
 0x6a4   :  { %1796 = vsyncmov [#allocation3 + $0xbf] }
 0x6a7   :  { %s1797_s3 = vpop.sfrf %1796 }
 0x6a8   :  { %p2575_p12 = scmp.ne.s32.totalorder %s1797_s3, 0 }
 0x6aa   :  { %1801 = shalt.err (%p2575_p12)  }
 0x6ab   :  { %1803 = vsyncmov [#allocation3 + $0xc0] }
 0x6ae   :  { %s1804_s16 = vpop.sfrf %1803 }
 0x6af   :  { %p2576_p13 = scmp.ne.s32.totalorder %s1804_s16, 0 }
 0x6b1   :  { %1808 = shalt.err (%p2576_p13)  }
 0x6b2   :  { %1810 = vsyncmov [#allocation3 + $0xc1] }
 0x6b5   :  { %s1811_s17 = vpop.sfrf %1810 }
 0x6b6   :  { %p2577_p0 = scmp.ne.s32.totalorder %s1811_s17, 0 }
 0x6b8   :  { %1815 = shalt.err (%p2577_p0)  }
 0x6b9   :  { %1817 = vsyncmov [#allocation3 + $0xc2] }
 0x6bc   :  { %s1818_s18 = vpop.sfrf %1817 }
 0x6bd   :  { %p2578_p1 = scmp.ne.s32.totalorder %s1818_s18, 0 }
 0x6bf   :  { %1822 = shalt.err (%p2578_p1)  }
 0x6c0   :  { %1824 = vsyncmov [#allocation3 + $0xc3] }
 0x6c3   :  { %s1825_s21 = vpop.sfrf %1824 }
 0x6c4   :  { %p2579_p2 = scmp.ne.s32.totalorder %s1825_s21, 0 }
 0x6c6   :  { %1829 = shalt.err (%p2579_p2)  }
 0x6c7   :  { %1831 = vsyncmov [#allocation3 + $0xc4] }
 0x6ca   :  { %s1832_s29 = vpop.sfrf %1831 }
 0x6cb   :  { %p2580_p5 = scmp.ne.s32.totalorder %s1832_s29, 0 }
 0x6cd   :  { %1836 = shalt.err (%p2580_p5)  }
 0x6ce   :  { %1838 = vsyncmov [#allocation3 + $0xc5] }
 0x6d1   :  { %s1839_s7 = vpop.sfrf %1838 }
 0x6d2   :  { %p2581_p6 = scmp.ne.s32.totalorder %s1839_s7, 0 }
 0x6d4   :  { %1843 = shalt.err (%p2581_p6)  }
 0x6d5   :  { %1845 = vsyncmov [#allocation3 + $0xc6] }
 0x6d8   :  { %s1846_s4 = vpop.sfrf %1845 }
 0x6d9   :  { %p2582_p3 = scmp.ne.s32.totalorder %s1846_s4, 0 }
 0x6db   :  { %1850 = shalt.err (%p2582_p3)  }
 0x6dc   :  { %1852 = vsyncmov [#allocation3 + $0xc7] }
 0x6df   :  { %s1853_s5 = vpop.sfrf %1852 }
 0x6e0   :  { %p2583_p4 = scmp.ne.s32.totalorder %s1853_s5, 0 }
 0x6e2   :  { %1857 = shalt.err (%p2583_p4)  }
 0x6e3   :  { %1859 = vsyncmov [#allocation3 + $0xc8] }
 0x6e6   :  { %s1860_s2 = vpop.sfrf %1859 }
 0x6e7   :  { %p2584_p7 = scmp.ne.s32.totalorder %s1860_s2, 0 }
 0x6e9   :  { %1864 = shalt.err (%p2584_p7)  }
 0x6ea   :  { %1866 = vsyncmov [#allocation3 + $0xc9] }
 0x6ed   :  { %s1867_s0 = vpop.sfrf %1866 }
 0x6ee   :  { %p2585_p8 = scmp.ne.s32.totalorder %s1867_s0, 0 }
 0x6f0   :  { %1871 = shalt.err (%p2585_p8)  }
 0x6f1   :  { %1873 = vsyncmov [#allocation3 + $0xca] }
 0x6f4   :  { %s1874_s24 = vpop.sfrf %1873 }
 0x6f5   :  { %p2586_p9 = scmp.ne.s32.totalorder %s1874_s24, 0 }
 0x6f7   :  { %1878 = shalt.err (%p2586_p9)  }
 0x6f8   :  { %1880 = vsyncmov [#allocation3 + $0xcb] }
 0x6fb   :  { %s1881_s20 = vpop.sfrf %1880 }
 0x6fc   :  { %p2587_p10 = scmp.ne.s32.totalorder %s1881_s20, 0 }
 0x6fe   :  { %1885 = shalt.err (%p2587_p10)  }
 0x6ff   :  { %1887 = vsyncmov [#allocation3 + $0xcc] }
 0x702   :  { %s1888_s6 = vpop.sfrf %1887 }
 0x703   :  { %p2588_p11 = scmp.ne.s32.totalorder %s1888_s6, 0 }
 0x705   :  { %1892 = shalt.err (%p2588_p11)  }
 0x706   :  { %1894 = vsyncmov [#allocation3 + $0xcd] }
 0x709   :  { %s1895_s12 = vpop.sfrf %1894 }
 0x70a   :  { %p2589_p12 = scmp.ne.s32.totalorder %s1895_s12, 0 }
 0x70c   :  { %1899 = shalt.err (%p2589_p12)  }
 0x70d   :  { %1901 = vsyncmov [#allocation3 + $0xce] }
 0x710   :  { %s1902_s13 = vpop.sfrf %1901 }
 0x711   :  { %p2590_p13 = scmp.ne.s32.totalorder %s1902_s13, 0 }
 0x713   :  { %1906 = shalt.err (%p2590_p13)  }
 0x714   :  { %1908 = vsyncmov [#allocation3 + $0xcf] }
 0x717   :  { %s1909_s14 = vpop.sfrf %1908 }
 0x718   :  { %p2591_p0 = scmp.ne.s32.totalorder %s1909_s14, 0 }
 0x71a   :  { %1913 = shalt.err (%p2591_p0)  }
 0x71b   :  { %1915 = vsyncmov [#allocation3 + $0xd0] }
 0x71e   :  { %s1916_s15 = vpop.sfrf %1915 }
 0x71f   :  { %p2592_p1 = scmp.ne.s32.totalorder %s1916_s15, 0 }
 0x721   :  { %1920 = shalt.err (%p2592_p1)  }
 0x722   :  { %1922 = vsyncmov [#allocation3 + $0xd1] }
 0x725   :  { %s1923_s22 = vpop.sfrf %1922 }
 0x726   :  { %p2593_p2 = scmp.ne.s32.totalorder %s1923_s22, 0 }
 0x728   :  { %1927 = shalt.err (%p2593_p2)  }
 0x729   :  { %1929 = vsyncmov [#allocation3 + $0xd2] }
 0x72c   :  { %s1930_s8 = vpop.sfrf %1929 }
 0x72d   :  { %p2594_p5 = scmp.ne.s32.totalorder %s1930_s8, 0 }
 0x72f   :  { %1934 = shalt.err (%p2594_p5)  }
 0x730   :  { %1936 = vsyncmov [#allocation3 + $0xd3] }
 0x733   :  { %s1937_s28 = vpop.sfrf %1936 }
 0x734   :  { %p2595_p6 = scmp.ne.s32.totalorder %s1937_s28, 0 }
 0x736   :  { %1941 = shalt.err (%p2595_p6)  }
 0x737   :  { %1943 = vsyncmov [#allocation3 + $0xd4] }
 0x73a   :  { %s1944_s9 = vpop.sfrf %1943 }
 0x73b   :  { %p2596_p3 = scmp.ne.s32.totalorder %s1944_s9, 0 }
 0x73d   :  { %1948 = shalt.err (%p2596_p3)  }
 0x73e   :  { %1950 = vsyncmov [#allocation3 + $0xd5] }
 0x741   :  { %s1951_s11 = vpop.sfrf %1950 }
 0x742   :  { %p2597_p4 = scmp.ne.s32.totalorder %s1951_s11, 0 }
 0x744   :  { %1955 = shalt.err (%p2597_p4)  }
 0x745   :  { %1957 = vsyncmov [#allocation3 + $0xd6] }
 0x748   :  { %s1958_s10 = vpop.sfrf %1957 }
 0x749   :  { %p2598_p7 = scmp.ne.s32.totalorder %s1958_s10, 0 }
 0x74b   :  { %1962 = shalt.err (%p2598_p7)  }
 0x74c   :  { %1964 = vsyncmov [#allocation3 + $0xd7] }
 0x74f   :  { %s1965_s27 = vpop.sfrf %1964 }
 0x750   :  { %p2599_p8 = scmp.ne.s32.totalorder %s1965_s27, 0 }
 0x752   :  { %1969 = shalt.err (%p2599_p8)  }
 0x753   :  { %1971 = vsyncmov [#allocation3 + $0xd8] }
 0x756   :  { %s1972_s23 = vpop.sfrf %1971 }
 0x757   :  { %p2600_p9 = scmp.ne.s32.totalorder %s1972_s23, 0 }
 0x759   :  { %1976 = shalt.err (%p2600_p9)  }
 0x75a   :  { %1978 = vsyncmov [#allocation3 + $0xd9] }
 0x75d   :  { %s1979_s19 = vpop.sfrf %1978 }
 0x75e   :  { %p2601_p10 = scmp.ne.s32.totalorder %s1979_s19, 0 }
 0x760   :  { %1983 = shalt.err (%p2601_p10)  }
 0x761   :  { %1985 = vsyncmov [#allocation3 + $0xda] }
 0x764   :  { %s1986_s25 = vpop.sfrf %1985 }
 0x765   :  { %p2602_p11 = scmp.ne.s32.totalorder %s1986_s25, 0 }
 0x767   :  { %1990 = shalt.err (%p2602_p11)  }
 0x768   :  { %1992 = vsyncmov [#allocation3 + $0xdb] }
 0x76b   :  { %s1993_s26 = vpop.sfrf %1992 }
 0x76c   :  { %p2603_p12 = scmp.ne.s32.totalorder %s1993_s26, 0 }
 0x76e   :  { %1997 = shalt.err (%p2603_p12)  }
 0x76f   :  { %1999 = vsyncmov [#allocation3 + $0xdc] }
 0x772   :  { %s2000_s30 = vpop.sfrf %1999 }
 0x773   :  { %p2604_p13 = scmp.ne.s32.totalorder %s2000_s30, 0 }
 0x775   :  { %2004 = shalt.err (%p2604_p13)  }
 0x776   :  { %2006 = vsyncmov [#allocation3 + $0xdd] }
 0x779   :  { %s2007_s1 = vpop.sfrf %2006 }
 0x77a   :  { %p2605_p0 = scmp.ne.s32.totalorder %s2007_s1, 0 }
 0x77c   :  { %2011 = shalt.err (%p2605_p0)  }
 0x77d   :  { %2013 = vsyncmov [#allocation3 + $0xde] }
 0x780   :  { %s2014_s3 = vpop.sfrf %2013 }
 0x781   :  { %p2606_p1 = scmp.ne.s32.totalorder %s2014_s3, 0 }
 0x783   :  { %2018 = shalt.err (%p2606_p1)  }
 0x784   :  { %2020 = vsyncmov [#allocation3 + $0xdf] }
 0x787   :  { %s2021_s16 = vpop.sfrf %2020 }
 0x788   :  { %p2607_p2 = scmp.ne.s32.totalorder %s2021_s16, 0 }
 0x78a   :  { %2025 = shalt.err (%p2607_p2)  }
 0x78b   :  { %2027 = vsyncmov [#allocation3 + $0xe0] }
 0x78e   :  { %s2028_s17 = vpop.sfrf %2027 }
 0x78f   :  { %p2608_p5 = scmp.ne.s32.totalorder %s2028_s17, 0 }
 0x791   :  { %2032 = shalt.err (%p2608_p5)  }
 0x792   :  { %2034 = vsyncmov [#allocation3 + $0xe1] }
 0x795   :  { %s2035_s18 = vpop.sfrf %2034 }
 0x796   :  { %p2609_p6 = scmp.ne.s32.totalorder %s2035_s18, 0 }
 0x798   :  { %2039 = shalt.err (%p2609_p6)  }
 0x799   :  { %2041 = vsyncmov [#allocation3 + $0xe2] }
 0x79c   :  { %s2042_s21 = vpop.sfrf %2041 }
 0x79d   :  { %p2610_p3 = scmp.ne.s32.totalorder %s2042_s21, 0 }
 0x79f   :  { %2046 = shalt.err (%p2610_p3)  }
 0x7a0   :  { %2048 = vsyncmov [#allocation3 + $0xe3] }
 0x7a3   :  { %s2049_s29 = vpop.sfrf %2048 }
 0x7a4   :  { %p2611_p4 = scmp.ne.s32.totalorder %s2049_s29, 0 }
 0x7a6   :  { %2053 = shalt.err (%p2611_p4)  }
 0x7a7   :  { %2055 = vsyncmov [#allocation3 + $0xe4] }
 0x7aa   :  { %s2056_s7 = vpop.sfrf %2055 }
 0x7ab   :  { %p2612_p7 = scmp.ne.s32.totalorder %s2056_s7, 0 }
 0x7ad   :  { %2060 = shalt.err (%p2612_p7)  }
 0x7ae   :  { %2062 = vsyncmov [#allocation3 + $0xe5] }
 0x7b1   :  { %s2063_s4 = vpop.sfrf %2062 }
 0x7b2   :  { %p2613_p8 = scmp.ne.s32.totalorder %s2063_s4, 0 }
 0x7b4   :  { %2067 = shalt.err (%p2613_p8)  }
 0x7b5   :  { %2069 = vsyncmov [#allocation3 + $0xe6] }
 0x7b8   :  { %s2070_s5 = vpop.sfrf %2069 }
 0x7b9   :  { %p2614_p9 = scmp.ne.s32.totalorder %s2070_s5, 0 }
 0x7bb   :  { %2074 = shalt.err (%p2614_p9)  }
 0x7bc   :  { %2076 = vsyncmov [#allocation3 + $0xe7] }
 0x7bf   :  { %s2077_s2 = vpop.sfrf %2076 }
 0x7c0   :  { %p2615_p10 = scmp.ne.s32.totalorder %s2077_s2, 0 }
 0x7c2   :  { %2081 = shalt.err (%p2615_p10)  }
 0x7c3   :  { %2083 = vsyncmov [#allocation3 + $0xe8] }
 0x7c6   :  { %s2084_s0 = vpop.sfrf %2083 }
 0x7c7   :  { %p2616_p11 = scmp.ne.s32.totalorder %s2084_s0, 0 }
 0x7c9   :  { %2088 = shalt.err (%p2616_p11)  }
 0x7ca   :  { %2090 = vsyncmov [#allocation3 + $0xe9] }
 0x7cd   :  { %s2091_s24 = vpop.sfrf %2090 }
 0x7ce   :  { %p2617_p12 = scmp.ne.s32.totalorder %s2091_s24, 0 }
 0x7d0   :  { %2095 = shalt.err (%p2617_p12)  }
 0x7d1   :  { %2097 = vsyncmov [#allocation3 + $0xea] }
 0x7d4   :  { %s2098_s20 = vpop.sfrf %2097 }
 0x7d5   :  { %p2618_p13 = scmp.ne.s32.totalorder %s2098_s20, 0 }
 0x7d7   :  { %2102 = shalt.err (%p2618_p13)  }
 0x7d8   :  { %2104 = vsyncmov [#allocation3 + $0xeb] }
 0x7db   :  { %s2105_s6 = vpop.sfrf %2104 }
 0x7dc   :  { %p2619_p0 = scmp.ne.s32.totalorder %s2105_s6, 0 }
 0x7de   :  { %2109 = shalt.err (%p2619_p0)  }
 0x7df   :  { %2111 = vsyncmov [#allocation3 + $0xec] }
 0x7e2   :  { %s2112_s12 = vpop.sfrf %2111 }
 0x7e3   :  { %p2620_p1 = scmp.ne.s32.totalorder %s2112_s12, 0 }
 0x7e5   :  { %2116 = shalt.err (%p2620_p1)  }
 0x7e6   :  { %2118 = vsyncmov [#allocation3 + $0xed] }
 0x7e9   :  { %s2119_s13 = vpop.sfrf %2118 }
 0x7ea   :  { %p2621_p2 = scmp.ne.s32.totalorder %s2119_s13, 0 }
 0x7ec   :  { %2123 = shalt.err (%p2621_p2)  }
 0x7ed   :  { %2125 = vsyncmov [#allocation3 + $0xee] }
 0x7f0   :  { %s2126_s14 = vpop.sfrf %2125 }
 0x7f1   :  { %p2622_p5 = scmp.ne.s32.totalorder %s2126_s14, 0 }
 0x7f3   :  { %2130 = shalt.err (%p2622_p5)  }
 0x7f4   :  { %2132 = vsyncmov [#allocation3 + $0xef] }
 0x7f7   :  { %s2133_s15 = vpop.sfrf %2132 }
 0x7f8   :  { %p2623_p6 = scmp.ne.s32.totalorder %s2133_s15, 0 }
 0x7fa   :  { %2137 = shalt.err (%p2623_p6)  }
 0x7fb   :  { %2139 = vsyncmov [#allocation3 + $0xf0] }
 0x7fe   :  { %s2140_s22 = vpop.sfrf %2139 }
 0x7ff   :  { %p2624_p3 = scmp.ne.s32.totalorder %s2140_s22, 0 }
 0x801   :  { %2144 = shalt.err (%p2624_p3)  }
 0x802   :  { %2146 = vsyncmov [#allocation3 + $0xf1] }
 0x805   :  { %s2147_s8 = vpop.sfrf %2146 }
 0x806   :  { %p2625_p4 = scmp.ne.s32.totalorder %s2147_s8, 0 }
 0x808   :  { %2151 = shalt.err (%p2625_p4)  }
 0x809   :  { %2153 = vsyncmov [#allocation3 + $0xf2] }
 0x80c   :  { %s2154_s28 = vpop.sfrf %2153 }
 0x80d   :  { %p2626_p7 = scmp.ne.s32.totalorder %s2154_s28, 0 }
 0x80f   :  { %2158 = shalt.err (%p2626_p7)  }
 0x810   :  { %2160 = vsyncmov [#allocation3 + $0xf3] }
 0x813   :  { %s2161_s9 = vpop.sfrf %2160 }
 0x814   :  { %p2627_p8 = scmp.ne.s32.totalorder %s2161_s9, 0 }
 0x816   :  { %2165 = shalt.err (%p2627_p8)  }
 0x817   :  { %2167 = vsyncmov [#allocation3 + $0xf4] }
 0x81a   :  { %s2168_s11 = vpop.sfrf %2167 }
 0x81b   :  { %p2628_p9 = scmp.ne.s32.totalorder %s2168_s11, 0 }
 0x81d   :  { %2172 = shalt.err (%p2628_p9)  }
 0x81e   :  { %2174 = vsyncmov [#allocation3 + $0xf5] }
 0x821   :  { %s2175_s10 = vpop.sfrf %2174 }
 0x822   :  { %p2629_p10 = scmp.ne.s32.totalorder %s2175_s10, 0 }
 0x824   :  { %2179 = shalt.err (%p2629_p10)  }
 0x825   :  { %2181 = vsyncmov [#allocation3 + $0xf6] }
 0x828   :  { %s2182_s27 = vpop.sfrf %2181 }
 0x829   :  { %p2630_p11 = scmp.ne.s32.totalorder %s2182_s27, 0 }
 0x82b   :  { %2186 = shalt.err (%p2630_p11)  }
 0x82c   :  { %2188 = vsyncmov [#allocation3 + $0xf7] }
 0x82f   :  { %s2189_s23 = vpop.sfrf %2188 }
 0x830   :  { %p2631_p12 = scmp.ne.s32.totalorder %s2189_s23, 0 }
 0x832   :  { %2193 = shalt.err (%p2631_p12)  }
 0x833   :  { %2195 = vsyncmov [#allocation3 + $0xf8] }
 0x836   :  { %s2196_s19 = vpop.sfrf %2195 }
 0x837   :  { %p2632_p13 = scmp.ne.s32.totalorder %s2196_s19, 0 }
 0x839   :  { %2200 = shalt.err (%p2632_p13)  }
 0x83a   :  { %2202 = vsyncmov [#allocation3 + $0xf9] }
 0x83d   :  { %s2203_s25 = vpop.sfrf %2202 }
 0x83e   :  { %p2633_p0 = scmp.ne.s32.totalorder %s2203_s25, 0 }
 0x840   :  { %2207 = shalt.err (%p2633_p0)  }
 0x841   :  { %2209 = vsyncmov [#allocation3 + $0xfa] }
 0x844   :  { %s2210_s26 = vpop.sfrf %2209 }
 0x845   :  { %p2634_p1 = scmp.ne.s32.totalorder %s2210_s26, 0 }
 0x847   :  { %2214 = shalt.err (%p2634_p1)  }
 0x848   :  { %2216 = vsyncmov [#allocation3 + $0xfb] }
 0x84b   :  { %s2217_s30 = vpop.sfrf %2216 }
 0x84c   :  { %p2635_p2 = scmp.ne.s32.totalorder %s2217_s30, 0 }
 0x84e   :  { %2221 = shalt.err (%p2635_p2)  }
 0x84f   :  { %2223 = vsyncmov [#allocation3 + $0xfc] }
 0x852   :  { %s2224_s1 = vpop.sfrf %2223 }
 0x853   :  { %p2636_p5 = scmp.ne.s32.totalorder %s2224_s1, 0 }
 0x855   :  { %2228 = shalt.err (%p2636_p5)  }
 0x856   :  { %2230 = vsyncmov [#allocation3 + $0xfd] }
 0x859   :  { %s2231_s3 = vpop.sfrf %2230 }
 0x85a   :  { %p2637_p6 = scmp.ne.s32.totalorder %s2231_s3, 0 }
 0x85c   :  { %2235 = shalt.err (%p2637_p6)  }
 0x85d   :  { %2237 = vsyncmov [#allocation3 + $0xfe] }
 0x860   :  { %s2238_s16 = vpop.sfrf %2237 }
 0x861   :  { %p2638_p3 = scmp.ne.s32.totalorder %s2238_s16, 0 }
 0x863   :  { %2242 = shalt.err (%p2638_p3)  }
 0x864   :  { %2244 = vsyncmov [#allocation3 + $0xff] }
 0x867   :  { %s2245_s17 = vpop.sfrf %2244 }
 0x868   :  { %p2639_p4 = scmp.ne.s32.totalorder %s2245_s17, 0 }
 0x86a   :  { %2249 = shalt.err (%p2639_p4)  }

</bundles_post_ra>
